<compile_context>
chip_gen: v5e
topology: v5e:2x2
jax: 0.10.0
libtpu: 0.0.40
codegen_flags: <defaults>
</compile_context>

<pallas_src>
import functools
import math

import numpy as np
import jax
import jax.numpy as jnp
from jax.experimental import pallas as pl
from jax.experimental.pallas import tpu as pltpu


def _phase_weight(w_t):
    """Pack a PyTorch ConvTranspose2d weight (Cin, Cout, 3, 3) into the (4Cin, 4Cout)
    phase-matmul matrix.

    ConvTranspose2d(s=2, p=1): output(oh, ow) sums x[ih, iw] * w[ci, co, kh, kw]
    with oh = 2*ih - 1 + kh, ow = 2*iw - 1 + kw.  Splitting by output parity gives
      ee = A@W11             eo = A@W12 + B@W10
      oe = A@W21 + C@W01     oo = A@W22 + B@W20 + C@W02 + D@W00
    with A = x[r,c], B = x[r,c+1], C = x[r+1,c], D = x[r+1,c+1] (zero off the edge).
    Row blocks (K): [A, B, C, D]; column blocks (N): [ee, eo, oe, oo].
    """
    cin, cout = w_t.shape[0], w_t.shape[1]
    tap = lambda kh, kw: w_t[:, :, kh, kw]          # (Cin, Cout)
    z = jnp.zeros((cin, cout), w_t.dtype)
    row_a = jnp.concatenate([tap(1, 1), tap(1, 2), tap(2, 1), tap(2, 2)], axis=1)
    row_b = jnp.concatenate([z,         tap(1, 0), z,         tap(2, 0)], axis=1)
    row_c = jnp.concatenate([z,         z,         tap(0, 1), tap(0, 2)], axis=1)
    row_d = jnp.concatenate([z,         z,         z,         tap(0, 0)], axis=1)
    return jnp.concatenate([row_a, row_b, row_c, row_d], axis=0)   # (4Cin, 4Cout)


def _head_kernel(x_ref, m_ref, w1_ref, b1_ref, w2_ref, b2_ref, w3_ref, b3_ref,
                 o_ref, *, h, couts):
    """One batch element: 3 fused transposed convs, all resident in VMEM.

    Activations are phase-separated w.r.t. the original (h, h) token grid:
    {(u, v): (h*h, C)} with image[s*i + u, s*j + v] = phases[(u, v)][i*h + j]
    (s = 1, 2, 4 for the inputs of layers 1, 2, 3).  A layer turns phase (u, v)
    into phases (2u+rp, 2v+cp); neighbour pixels are either another phase plane
    or a +1 coarse-grid shift of one, so no interleaving is ever materialized.
    """
    hw = h * h
    not_last_col = m_ref[...]                     # (hw, 1) bf16 {0,1}; 0 where j == h-1

    def shift_flat(p, k):                         # out[m] = p[m + k], zero padded
        pad = jnp.zeros((k, p.shape[1]), p.dtype)
        return jnp.concatenate([p[k:, :], pad], axis=0)

    def shift_col(p):                             # x[i, j+1]
        return shift_flat(p, 1) * not_last_col

    def shift_row(p):                             # x[i+1, j]
        return shift_flat(p, h)

    def shift_rowcol(p):                          # x[i+1, j+1]
        return shift_flat(p, h + 1) * not_last_col

    def tconv(phases, s, w_ref, b_ref, cout, relu, split):
        # boundary shifts of the phase planes (each computed once)
        sc = {u: shift_col(phases[(u, 0)]) for u in range(s)}
        sr = {v: shift_row(phases[(0, v)]) for v in range(s)}
        src = shift_rowcol(phases[(0, 0)])
        blocks = []
        for u in range(s):
            for v in range(s):
                a = phases[(u, v)]
                bb = phases[(u, v + 1)] if v + 1 < s else sc[u]
                cc = phases[(u + 1, v)] if u + 1 < s else sr[v]
                if u + 1 < s and v + 1 < s:
                    dd = phases[(u + 1, v + 1)]
                elif u + 1 < s:
                    dd = sc[u + 1]
                elif v + 1 < s:
                    dd = sr[v + 1]
                else:
                    dd = src
                blocks.append(jnp.concatenate([a, bb, cc, dd], axis=1))
        x_cat = jnp.concatenate(blocks, axis=0)              # (s*s*hw, 4*Cin) bf16
        y = jnp.dot(x_cat, w_ref[...], preferred_element_type=jnp.float32)
        y = y + b_ref[...]
        if relu:
            y = jnp.maximum(y, 0.0)
        if not split:
            return y                                         # (s*s*hw, 4*cout) f32
        yb = y.astype(jnp.bfloat16)
        new_phases = {}
        g = 0
        for u in range(s):
            for v in range(s):
                blk = yb[g * hw:(g + 1) * hw, :]
                for rp in range(2):
                    for cp in range(2):
                        ph = 2 * rp + cp
                        new_phases[(2 * u + rp, 2 * v + cp)] = (
                            blk[:, ph * cout:(ph + 1) * cout])
                g += 1
        return new_phases

    p = {(0, 0): x_ref[0]}                                   # (hw, Cin) bf16 tokens
    p = tconv(p, 1, w1_ref, b1_ref, couts[0], relu=True, split=True)
    p = tconv(p, 2, w2_ref, b2_ref, couts[1], relu=True, split=True)
    y = tconv(p, 4, w3_ref, b3_ref, couts[2], relu=False, split=False)
    o_ref[0] = y                                             # (16*hw, 4*couts[2]) f32


def _head_pallas(x_tokens, params, h):
    b, n, cin = x_tokens.shape
    hw = n
    c1 = params["w1"].shape[1]
    c2 = params["w2"].shape[1]
    c3 = params["w3"].shape[1]

    # dense phase-packed weights (bf16) + phase-tiled biases (f32)
    w1 = _phase_weight(params["w1"]).astype(jnp.bfloat16)    # (4*cin, 4*c1)
    w2 = _phase_weight(params["w2"]).astype(jnp.bfloat16)    # (4*c1,  4*c2)
    w3 = _phase_weight(params["w3"]).astype(jnp.bfloat16)    # (4*c2,  4*c3)
    b1 = jnp.tile(params["b1"].astype(jnp.float32), 4)[None, :]
    b2 = jnp.tile(params["b2"].astype(jnp.float32), 4)[None, :]
    b3 = jnp.tile(params["b3"].astype(jnp.float32), 4)[None, :]

    # {0,1} mask, zero where the token column index j == h-1 (kills column wrap-around)
    col_mask = (jnp.arange(hw) % h != h - 1).astype(jnp.bfloat16)[:, None]
    x_bf = x_tokens.astype(jnp.bfloat16)

    kernel = functools.partial(_head_kernel, h=h, couts=(c1, c2, c3))
    return pl.pallas_call(
        kernel,
        out_shape=jax.ShapeDtypeStruct((b, 16 * hw, 4 * c3), jnp.float32),
        grid=(b,),
        in_specs=[
            pl.BlockSpec((1, hw, cin), lambda i: (i, 0, 0)),
            pl.BlockSpec((hw, 1), lambda i: (0, 0)),
            pl.BlockSpec(w1.shape, lambda i: (0, 0)),
            pl.BlockSpec(b1.shape, lambda i: (0, 0)),
            pl.BlockSpec(w2.shape, lambda i: (0, 0)),
            pl.BlockSpec(b2.shape, lambda i: (0, 0)),
            pl.BlockSpec(w3.shape, lambda i: (0, 0)),
            pl.BlockSpec(b3.shape, lambda i: (0, 0)),
        ],
        out_specs=pl.BlockSpec((1, 16 * hw, 4 * c3), lambda i: (i, 0, 0)),
        compiler_params=pltpu.CompilerParams(
            dimension_semantics=("parallel",)),
    )(x_bf, col_mask, w1, b1, w2, b2, w3, b3)


def rec_trac_head4_forward(x_tokens, params):
    """x_tokens: (B, N, C), N a perfect square (= h*h).
    Returns NCHW (B, 2, 8h, 8h), matching the PyTorch module's output layout."""
    b, n, _ = x_tokens.shape
    h = int(math.isqrt(n))
    assert h * h == n and h >= 2, "token count must be a perfect square (h >= 2)"
    c3 = params["w3"].shape[1]
    raw = _head_pallas(x_tokens, params, h)              # (B, 16*h*h, 4*c3)
    # rows: (u, v, i, j) with (u, v) in [0,4)^2 the layer-3 input phases;
    # cols: (rp, cp, ch).  Final pixel = (8*i + 2*u + rp, 8*j + 2*v + cp).
    out = raw.reshape(b, 4, 4, h, h, 2, 2, c3)           # (b, u, v, i, j, rp, cp, ch)
    out = jnp.transpose(out, (0, 7, 3, 1, 5, 4, 2, 6))   # (b, ch, i, u, rp, j, v, cp)
    return out.reshape(b, c3, 8 * h, 8 * h)


def _reference_forward(x_tokens, params):
    """Pure-JAX reference (lhs-dilated conv == transposed conv), NCHW output."""
    b, n, c = x_tokens.shape
    h = int(math.isqrt(n))
    x = jnp.transpose(x_tokens.reshape(b, h, h, c), (0, 3, 1, 2))  # NCHW

    def tconv(x, w_t, bias, relu):
        w_oihw = jnp.transpose(jnp.flip(w_t, axis=(2, 3)), (1, 0, 2, 3))
        y = jax.lax.conv_general_dilated(
            x, w_oihw, window_strides=(1, 1),
            padding=((1, 2), (1, 2)), lhs_dilation=(2, 2),
            dimension_numbers=("NCHW", "OIHW", "NCHW"))
        y = y + bias[None, :, None, None]
        return jnp.maximum(y, 0.0) if relu else y

    x = tconv(x, params["w1"], params["b1"], True)
    x = tconv(x, params["w2"], params["b2"], True)
    x = tconv(x, params["w3"], params["b3"], False)
    return x                                             # (B, 2, 8h, 8h)


if __name__ == "__main__":
    key = jax.random.PRNGKey(0)
    in_dim = 32
    B, N = 2, 16                          # 16 tokens -> 4x4 grid -> 32x32 output
    k = jax.random.split(key, 7)
    x = jax.random.normal(k[0], (B, N, in_dim), jnp.float32)
    # PyTorch ConvTranspose2d weight layout: (Cin, Cout, kH, kW)
    params = {
        "w1": 0.1 * jax.random.normal(k[1], (in_dim, 64, 3, 3), jnp.float32),
        "b1": 0.1 * jax.random.normal(k[2], (64,), jnp.float32),
        "w2": 0.1 * jax.random.normal(k[3], (64, 32, 3, 3), jnp.float32),
        "b2": 0.1 * jax.random.normal(k[4], (32,), jnp.float32),
        "w3": 0.1 * jax.random.normal(k[5], (32, 2, 3, 3), jnp.float32),
        "b3": 0.1 * jax.random.normal(k[6], (2,), jnp.float32),
    }

    fwd = jax.jit(rec_trac_head4_forward)
    out = jax.block_until_ready(fwd(x, params))
    assert out.shape == (B, 2, 32, 32), out.shape

    ref = jax.block_until_ready(_reference_forward(x, params))
    # bf16 MXU inputs with f32 accumulation across 3 chained layers -> ~1-2% rel error
    np.testing.assert_allclose(np.asarray(out), np.asarray(ref), rtol=3e-2, atol=3e-2)
    print("KERNEL_OK")
</pallas_src>

<mosaic_0001>
module attributes {stable_mosaic.version = 11 : i64} {
  func.func @_head_kernel(%arg0: i32, %arg1: memref<1x16x32xbf16, #tpu.memory_space<vmem>>, %arg2: memref<16x1xbf16, #tpu.memory_space<vmem>>, %arg3: memref<128x256xbf16, #tpu.memory_space<vmem>>, %arg4: memref<1x256xf32, #tpu.memory_space<vmem>>, %arg5: memref<256x128xbf16, #tpu.memory_space<vmem>>, %arg6: memref<1x128xf32, #tpu.memory_space<vmem>>, %arg7: memref<128x8xbf16, #tpu.memory_space<vmem>>, %arg8: memref<1x8xf32, #tpu.memory_space<vmem>>, %arg9: memref<1x256x8xf32, #tpu.memory_space<vmem>>) attributes {dimension_semantics = [#tpu.dimension_semantics<parallel>], iteration_bounds = array<i64: 2>, scalar_prefetch = 0 : i64, scratch_operands = 0 : i64, tpu.core_type = #tpu.core_type<tc>, window_params = [{transform_indices = @transform_0, window_bounds = array<i64: 1, 16, 32>}, {pipeline_mode = #tpu.pipeline_mode<synchronous>, transform_indices = @transform_1, window_bounds = array<i64: 16, 1>}, {pipeline_mode = #tpu.pipeline_mode<synchronous>, transform_indices = @transform_2, window_bounds = array<i64: 128, 256>}, {pipeline_mode = #tpu.pipeline_mode<synchronous>, transform_indices = @transform_3, window_bounds = array<i64: 1, 256>}, {pipeline_mode = #tpu.pipeline_mode<synchronous>, transform_indices = @transform_4, window_bounds = array<i64: 256, 128>}, {pipeline_mode = #tpu.pipeline_mode<synchronous>, transform_indices = @transform_5, window_bounds = array<i64: 1, 128>}, {pipeline_mode = #tpu.pipeline_mode<synchronous>, transform_indices = @transform_6, window_bounds = array<i64: 128, 8>}, {pipeline_mode = #tpu.pipeline_mode<synchronous>, transform_indices = @transform_7, window_bounds = array<i64: 1, 8>}, {transform_indices = @transform_8, window_bounds = array<i64: 1, 256, 8>}]} {
    %c0 = arith.constant 0 : index
    %c0_0 = arith.constant 0 : index
    %0 = vector.load %arg2[%c0, %c0_0] : memref<16x1xbf16, #tpu.memory_space<vmem>>, vector<16x1xbf16>
    %c0_1 = arith.constant 0 : index
    %c0_2 = arith.constant 0 : index
    %c0_3 = arith.constant 0 : index
    %1 = vector.load %arg1[%c0_1, %c0_2, %c0_3] : memref<1x16x32xbf16, #tpu.memory_space<vmem>>, vector<1x16x32xbf16>
    %2 = vector.shape_cast %1 : vector<1x16x32xbf16> to vector<16x32xbf16>
    %cst = arith.constant 0.000000e+00 : bf16
    %3 = vector.broadcast %cst : bf16 to vector<1x32xbf16>
    %4 = vector.extract_strided_slice %2 {offsets = [1, 0], sizes = [15, 32], strides = [1, 1]} : vector<16x32xbf16> to vector<15x32xbf16>
    %5 = tpu.concatenate %4, %3 in 0 : vector<15x32xbf16>, vector<1x32xbf16> -> vector<16x32xbf16>
    %6 = vector.broadcast %0 : vector<16x1xbf16> to vector<16x32xbf16>
    %7 = arith.mulf %5, %6 : vector<16x32xbf16>
    %cst_4 = arith.constant 0.000000e+00 : bf16
    %8 = vector.broadcast %cst_4 : bf16 to vector<4x32xbf16>
    %9 = vector.extract_strided_slice %2 {offsets = [4, 0], sizes = [12, 32], strides = [1, 1]} : vector<16x32xbf16> to vector<12x32xbf16>
    %10 = tpu.concatenate %9, %8 in 0 : vector<12x32xbf16>, vector<4x32xbf16> -> vector<16x32xbf16>
    %cst_5 = arith.constant 0.000000e+00 : bf16
    %11 = vector.broadcast %cst_5 : bf16 to vector<5x32xbf16>
    %12 = vector.extract_strided_slice %2 {offsets = [5, 0], sizes = [11, 32], strides = [1, 1]} : vector<16x32xbf16> to vector<11x32xbf16>
    %13 = tpu.concatenate %12, %11 in 0 : vector<11x32xbf16>, vector<5x32xbf16> -> vector<16x32xbf16>
    %14 = vector.broadcast %0 : vector<16x1xbf16> to vector<16x32xbf16>
    %15 = arith.mulf %13, %14 : vector<16x32xbf16>
    %16 = tpu.concatenate %2, %7, %10, %15 in 1 : vector<16x32xbf16>, vector<16x32xbf16>, vector<16x32xbf16>, vector<16x32xbf16> -> vector<16x128xbf16>
    %c0_6 = arith.constant 0 : index
    %c0_7 = arith.constant 0 : index
    %17 = vector.load %arg3[%c0_6, %c0_7] : memref<128x256xbf16, #tpu.memory_space<vmem>>, vector<128x256xbf16>
    %cst_8 = arith.constant dense<0.000000e+00> : vector<16x256xf32>
    %18 = tpu.matmul %16, %17, %cst_8 {dimension_numbers = #tpu.dot_dimension_numbers<[1], [0], [0], [1], [0, 0, 1, 1], [], []>} : vector<16x128xbf16>, vector<128x256xbf16>, vector<16x256xf32> -> vector<16x256xf32>
    %c0_9 = arith.constant 0 : index
    %c0_10 = arith.constant 0 : index
    %19 = vector.load %arg4[%c0_9, %c0_10] : memref<1x256xf32, #tpu.memory_space<vmem>>, vector<1x256xf32>
    %20 = vector.broadcast %19 : vector<1x256xf32> to vector<16x256xf32>
    %21 = arith.addf %18, %20 : vector<16x256xf32>
    %cst_11 = arith.constant 0.000000e+00 : f32
    %22 = vector.broadcast %cst_11 : f32 to vector<16x256xf32>
    %23 = arith.maximumf %21, %22 : vector<16x256xf32>
    %24 = arith.truncf %23 : vector<16x256xf32> to vector<16x256xbf16>
    %25 = vector.extract_strided_slice %24 {offsets = [0, 0], sizes = [16, 64], strides = [1, 1]} : vector<16x256xbf16> to vector<16x64xbf16>
    %26 = vector.extract_strided_slice %24 {offsets = [0, 64], sizes = [16, 64], strides = [1, 1]} : vector<16x256xbf16> to vector<16x64xbf16>
    %27 = vector.extract_strided_slice %24 {offsets = [0, 128], sizes = [16, 64], strides = [1, 1]} : vector<16x256xbf16> to vector<16x64xbf16>
    %28 = vector.extract_strided_slice %24 {offsets = [0, 192], sizes = [16, 64], strides = [1, 1]} : vector<16x256xbf16> to vector<16x64xbf16>
    %cst_12 = arith.constant 0.000000e+00 : bf16
    %29 = vector.broadcast %cst_12 : bf16 to vector<1x64xbf16>
    %30 = vector.extract_strided_slice %25 {offsets = [1, 0], sizes = [15, 64], strides = [1, 1]} : vector<16x64xbf16> to vector<15x64xbf16>
    %31 = tpu.concatenate %30, %29 in 0 : vector<15x64xbf16>, vector<1x64xbf16> -> vector<16x64xbf16>
    %32 = vector.broadcast %0 : vector<16x1xbf16> to vector<16x64xbf16>
    %33 = arith.mulf %31, %32 : vector<16x64xbf16>
    %cst_13 = arith.constant 0.000000e+00 : bf16
    %34 = vector.broadcast %cst_13 : bf16 to vector<1x64xbf16>
    %35 = vector.extract_strided_slice %27 {offsets = [1, 0], sizes = [15, 64], strides = [1, 1]} : vector<16x64xbf16> to vector<15x64xbf16>
    %36 = tpu.concatenate %35, %34 in 0 : vector<15x64xbf16>, vector<1x64xbf16> -> vector<16x64xbf16>
    %37 = vector.broadcast %0 : vector<16x1xbf16> to vector<16x64xbf16>
    %38 = arith.mulf %36, %37 : vector<16x64xbf16>
    %cst_14 = arith.constant 0.000000e+00 : bf16
    %39 = vector.broadcast %cst_14 : bf16 to vector<4x64xbf16>
    %40 = vector.extract_strided_slice %25 {offsets = [4, 0], sizes = [12, 64], strides = [1, 1]} : vector<16x64xbf16> to vector<12x64xbf16>
    %41 = tpu.concatenate %40, %39 in 0 : vector<12x64xbf16>, vector<4x64xbf16> -> vector<16x64xbf16>
    %cst_15 = arith.constant 0.000000e+00 : bf16
    %42 = vector.broadcast %cst_15 : bf16 to vector<4x64xbf16>
    %43 = vector.extract_strided_slice %26 {offsets = [4, 0], sizes = [12, 64], strides = [1, 1]} : vector<16x64xbf16> to vector<12x64xbf16>
    %44 = tpu.concatenate %43, %42 in 0 : vector<12x64xbf16>, vector<4x64xbf16> -> vector<16x64xbf16>
    %cst_16 = arith.constant 0.000000e+00 : bf16
    %45 = vector.broadcast %cst_16 : bf16 to vector<5x64xbf16>
    %46 = vector.extract_strided_slice %25 {offsets = [5, 0], sizes = [11, 64], strides = [1, 1]} : vector<16x64xbf16> to vector<11x64xbf16>
    %47 = tpu.concatenate %46, %45 in 0 : vector<11x64xbf16>, vector<5x64xbf16> -> vector<16x64xbf16>
    %48 = vector.broadcast %0 : vector<16x1xbf16> to vector<16x64xbf16>
    %49 = arith.mulf %47, %48 : vector<16x64xbf16>
    %50 = tpu.concatenate %25, %26, %27, %28 in 1 : vector<16x64xbf16>, vector<16x64xbf16>, vector<16x64xbf16>, vector<16x64xbf16> -> vector<16x256xbf16>
    %51 = tpu.concatenate %26, %33, %28, %38 in 1 : vector<16x64xbf16>, vector<16x64xbf16>, vector<16x64xbf16>, vector<16x64xbf16> -> vector<16x256xbf16>
    %52 = tpu.concatenate %27, %28, %41, %44 in 1 : vector<16x64xbf16>, vector<16x64xbf16>, vector<16x64xbf16>, vector<16x64xbf16> -> vector<16x256xbf16>
    %53 = tpu.concatenate %28, %38, %44, %49 in 1 : vector<16x64xbf16>, vector<16x64xbf16>, vector<16x64xbf16>, vector<16x64xbf16> -> vector<16x256xbf16>
    %54 = tpu.concatenate %50, %51, %52, %53 in 0 : vector<16x256xbf16>, vector<16x256xbf16>, vector<16x256xbf16>, vector<16x256xbf16> -> vector<64x256xbf16>
    %c0_17 = arith.constant 0 : index
    %c0_18 = arith.constant 0 : index
    %55 = vector.load %arg5[%c0_17, %c0_18] : memref<256x128xbf16, #tpu.memory_space<vmem>>, vector<256x128xbf16>
    %cst_19 = arith.constant dense<0.000000e+00> : vector<64x128xf32>
    %56 = tpu.matmul %54, %55, %cst_19 {dimension_numbers = #tpu.dot_dimension_numbers<[1], [0], [0], [1], [0, 0, 1, 1], [], []>} : vector<64x256xbf16>, vector<256x128xbf16>, vector<64x128xf32> -> vector<64x128xf32>
    %c0_20 = arith.constant 0 : index
    %c0_21 = arith.constant 0 : index
    %57 = vector.load %arg6[%c0_20, %c0_21] : memref<1x128xf32, #tpu.memory_space<vmem>>, vector<1x128xf32>
    %58 = vector.broadcast %57 : vector<1x128xf32> to vector<64x128xf32>
    %59 = arith.addf %56, %58 : vector<64x128xf32>
    %cst_22 = arith.constant 0.000000e+00 : f32
    %60 = vector.broadcast %cst_22 : f32 to vector<64x128xf32>
    %61 = arith.maximumf %59, %60 : vector<64x128xf32>
    %62 = arith.truncf %61 : vector<64x128xf32> to vector<64x128xbf16>
    %63 = vector.extract_strided_slice %62 {offsets = [0, 0], sizes = [16, 128], strides = [1, 1]} : vector<64x128xbf16> to vector<16x128xbf16>
    %64 = vector.extract_strided_slice %63 {offsets = [0, 0], sizes = [16, 32], strides = [1, 1]} : vector<16x128xbf16> to vector<16x32xbf16>
    %65 = vector.extract_strided_slice %63 {offsets = [0, 32], sizes = [16, 32], strides = [1, 1]} : vector<16x128xbf16> to vector<16x32xbf16>
    %66 = vector.extract_strided_slice %63 {offsets = [0, 64], sizes = [16, 32], strides = [1, 1]} : vector<16x128xbf16> to vector<16x32xbf16>
    %67 = vector.extract_strided_slice %63 {offsets = [0, 96], sizes = [16, 32], strides = [1, 1]} : vector<16x128xbf16> to vector<16x32xbf16>
    %68 = vector.extract_strided_slice %62 {offsets = [16, 0], sizes = [16, 128], strides = [1, 1]} : vector<64x128xbf16> to vector<16x128xbf16>
    %69 = vector.extract_strided_slice %68 {offsets = [0, 0], sizes = [16, 32], strides = [1, 1]} : vector<16x128xbf16> to vector<16x32xbf16>
    %70 = vector.extract_strided_slice %68 {offsets = [0, 32], sizes = [16, 32], strides = [1, 1]} : vector<16x128xbf16> to vector<16x32xbf16>
    %71 = vector.extract_strided_slice %68 {offsets = [0, 64], sizes = [16, 32], strides = [1, 1]} : vector<16x128xbf16> to vector<16x32xbf16>
    %72 = vector.extract_strided_slice %68 {offsets = [0, 96], sizes = [16, 32], strides = [1, 1]} : vector<16x128xbf16> to vector<16x32xbf16>
    %73 = vector.extract_strided_slice %62 {offsets = [32, 0], sizes = [16, 128], strides = [1, 1]} : vector<64x128xbf16> to vector<16x128xbf16>
    %74 = vector.extract_strided_slice %73 {offsets = [0, 0], sizes = [16, 32], strides = [1, 1]} : vector<16x128xbf16> to vector<16x32xbf16>
    %75 = vector.extract_strided_slice %73 {offsets = [0, 32], sizes = [16, 32], strides = [1, 1]} : vector<16x128xbf16> to vector<16x32xbf16>
    %76 = vector.extract_strided_slice %73 {offsets = [0, 64], sizes = [16, 32], strides = [1, 1]} : vector<16x128xbf16> to vector<16x32xbf16>
    %77 = vector.extract_strided_slice %73 {offsets = [0, 96], sizes = [16, 32], strides = [1, 1]} : vector<16x128xbf16> to vector<16x32xbf16>
    %78 = vector.extract_strided_slice %62 {offsets = [48, 0], sizes = [16, 128], strides = [1, 1]} : vector<64x128xbf16> to vector<16x128xbf16>
    %79 = vector.extract_strided_slice %78 {offsets = [0, 0], sizes = [16, 32], strides = [1, 1]} : vector<16x128xbf16> to vector<16x32xbf16>
    %80 = vector.extract_strided_slice %78 {offsets = [0, 32], sizes = [16, 32], strides = [1, 1]} : vector<16x128xbf16> to vector<16x32xbf16>
    %81 = vector.extract_strided_slice %78 {offsets = [0, 64], sizes = [16, 32], strides = [1, 1]} : vector<16x128xbf16> to vector<16x32xbf16>
    %82 = vector.extract_strided_slice %78 {offsets = [0, 96], sizes = [16, 32], strides = [1, 1]} : vector<16x128xbf16> to vector<16x32xbf16>
    %cst_23 = arith.constant 0.000000e+00 : bf16
    %83 = vector.broadcast %cst_23 : bf16 to vector<1x32xbf16>
    %84 = vector.extract_strided_slice %64 {offsets = [1, 0], sizes = [15, 32], strides = [1, 1]} : vector<16x32xbf16> to vector<15x32xbf16>
    %85 = tpu.concatenate %84, %83 in 0 : vector<15x32xbf16>, vector<1x32xbf16> -> vector<16x32xbf16>
    %86 = vector.broadcast %0 : vector<16x1xbf16> to vector<16x32xbf16>
    %87 = arith.mulf %85, %86 : vector<16x32xbf16>
    %cst_24 = arith.constant 0.000000e+00 : bf16
    %88 = vector.broadcast %cst_24 : bf16 to vector<1x32xbf16>
    %89 = vector.extract_strided_slice %66 {offsets = [1, 0], sizes = [15, 32], strides = [1, 1]} : vector<16x32xbf16> to vector<15x32xbf16>
    %90 = tpu.concatenate %89, %88 in 0 : vector<15x32xbf16>, vector<1x32xbf16> -> vector<16x32xbf16>
    %91 = vector.broadcast %0 : vector<16x1xbf16> to vector<16x32xbf16>
    %92 = arith.mulf %90, %91 : vector<16x32xbf16>
    %cst_25 = arith.constant 0.000000e+00 : bf16
    %93 = vector.broadcast %cst_25 : bf16 to vector<1x32xbf16>
    %94 = vector.extract_strided_slice %74 {offsets = [1, 0], sizes = [15, 32], strides = [1, 1]} : vector<16x32xbf16> to vector<15x32xbf16>
    %95 = tpu.concatenate %94, %93 in 0 : vector<15x32xbf16>, vector<1x32xbf16> -> vector<16x32xbf16>
    %96 = vector.broadcast %0 : vector<16x1xbf16> to vector<16x32xbf16>
    %97 = arith.mulf %95, %96 : vector<16x32xbf16>
    %cst_26 = arith.constant 0.000000e+00 : bf16
    %98 = vector.broadcast %cst_26 : bf16 to vector<1x32xbf16>
    %99 = vector.extract_strided_slice %76 {offsets = [1, 0], sizes = [15, 32], strides = [1, 1]} : vector<16x32xbf16> to vector<15x32xbf16>
    %100 = tpu.concatenate %99, %98 in 0 : vector<15x32xbf16>, vector<1x32xbf16> -> vector<16x32xbf16>
    %101 = vector.broadcast %0 : vector<16x1xbf16> to vector<16x32xbf16>
    %102 = arith.mulf %100, %101 : vector<16x32xbf16>
    %cst_27 = arith.constant 0.000000e+00 : bf16
    %103 = vector.broadcast %cst_27 : bf16 to vector<4x32xbf16>
    %104 = vector.extract_strided_slice %64 {offsets = [4, 0], sizes = [12, 32], strides = [1, 1]} : vector<16x32xbf16> to vector<12x32xbf16>
    %105 = tpu.concatenate %104, %103 in 0 : vector<12x32xbf16>, vector<4x32xbf16> -> vector<16x32xbf16>
    %cst_28 = arith.constant 0.000000e+00 : bf16
    %106 = vector.broadcast %cst_28 : bf16 to vector<4x32xbf16>
    %107 = vector.extract_strided_slice %65 {offsets = [4, 0], sizes = [12, 32], strides = [1, 1]} : vector<16x32xbf16> to vector<12x32xbf16>
    %108 = tpu.concatenate %107, %106 in 0 : vector<12x32xbf16>, vector<4x32xbf16> -> vector<16x32xbf16>
    %cst_29 = arith.constant 0.000000e+00 : bf16
    %109 = vector.broadcast %cst_29 : bf16 to vector<4x32xbf16>
    %110 = vector.extract_strided_slice %69 {offsets = [4, 0], sizes = [12, 32], strides = [1, 1]} : vector<16x32xbf16> to vector<12x32xbf16>
    %111 = tpu.concatenate %110, %109 in 0 : vector<12x32xbf16>, vector<4x32xbf16> -> vector<16x32xbf16>
    %cst_30 = arith.constant 0.000000e+00 : bf16
    %112 = vector.broadcast %cst_30 : bf16 to vector<4x32xbf16>
    %113 = vector.extract_strided_slice %70 {offsets = [4, 0], sizes = [12, 32], strides = [1, 1]} : vector<16x32xbf16> to vector<12x32xbf16>
    %114 = tpu.concatenate %113, %112 in 0 : vector<12x32xbf16>, vector<4x32xbf16> -> vector<16x32xbf16>
    %cst_31 = arith.constant 0.000000e+00 : bf16
    %115 = vector.broadcast %cst_31 : bf16 to vector<5x32xbf16>
    %116 = vector.extract_strided_slice %64 {offsets = [5, 0], sizes = [11, 32], strides = [1, 1]} : vector<16x32xbf16> to vector<11x32xbf16>
    %117 = tpu.concatenate %116, %115 in 0 : vector<11x32xbf16>, vector<5x32xbf16> -> vector<16x32xbf16>
    %118 = vector.broadcast %0 : vector<16x1xbf16> to vector<16x32xbf16>
    %119 = arith.mulf %117, %118 : vector<16x32xbf16>
    %120 = tpu.concatenate %64, %65, %66, %67 in 1 : vector<16x32xbf16>, vector<16x32xbf16>, vector<16x32xbf16>, vector<16x32xbf16> -> vector<16x128xbf16>
    %121 = tpu.concatenate %65, %69, %67, %71 in 1 : vector<16x32xbf16>, vector<16x32xbf16>, vector<16x32xbf16>, vector<16x32xbf16> -> vector<16x128xbf16>
    %122 = tpu.concatenate %69, %70, %71, %72 in 1 : vector<16x32xbf16>, vector<16x32xbf16>, vector<16x32xbf16>, vector<16x32xbf16> -> vector<16x128xbf16>
    %123 = tpu.concatenate %70, %87, %72, %92 in 1 : vector<16x32xbf16>, vector<16x32xbf16>, vector<16x32xbf16>, vector<16x32xbf16> -> vector<16x128xbf16>
    %124 = tpu.concatenate %66, %67, %74, %75 in 1 : vector<16x32xbf16>, vector<16x32xbf16>, vector<16x32xbf16>, vector<16x32xbf16> -> vector<16x128xbf16>
    %125 = tpu.concatenate %67, %71, %75, %79 in 1 : vector<16x32xbf16>, vector<16x32xbf16>, vector<16x32xbf16>, vector<16x32xbf16> -> vector<16x128xbf16>
    %126 = tpu.concatenate %71, %72, %79, %80 in 1 : vector<16x32xbf16>, vector<16x32xbf16>, vector<16x32xbf16>, vector<16x32xbf16> -> vector<16x128xbf16>
    %127 = tpu.concatenate %72, %92, %80, %97 in 1 : vector<16x32xbf16>, vector<16x32xbf16>, vector<16x32xbf16>, vector<16x32xbf16> -> vector<16x128xbf16>
    %128 = tpu.concatenate %74, %75, %76, %77 in 1 : vector<16x32xbf16>, vector<16x32xbf16>, vector<16x32xbf16>, vector<16x32xbf16> -> vector<16x128xbf16>
    %129 = tpu.concatenate %75, %79, %77, %81 in 1 : vector<16x32xbf16>, vector<16x32xbf16>, vector<16x32xbf16>, vector<16x32xbf16> -> vector<16x128xbf16>
    %130 = tpu.concatenate %79, %80, %81, %82 in 1 : vector<16x32xbf16>, vector<16x32xbf16>, vector<16x32xbf16>, vector<16x32xbf16> -> vector<16x128xbf16>
    %131 = tpu.concatenate %80, %97, %82, %102 in 1 : vector<16x32xbf16>, vector<16x32xbf16>, vector<16x32xbf16>, vector<16x32xbf16> -> vector<16x128xbf16>
    %132 = tpu.concatenate %76, %77, %105, %108 in 1 : vector<16x32xbf16>, vector<16x32xbf16>, vector<16x32xbf16>, vector<16x32xbf16> -> vector<16x128xbf16>
    %133 = tpu.concatenate %77, %81, %108, %111 in 1 : vector<16x32xbf16>, vector<16x32xbf16>, vector<16x32xbf16>, vector<16x32xbf16> -> vector<16x128xbf16>
    %134 = tpu.concatenate %81, %82, %111, %114 in 1 : vector<16x32xbf16>, vector<16x32xbf16>, vector<16x32xbf16>, vector<16x32xbf16> -> vector<16x128xbf16>
    %135 = tpu.concatenate %82, %102, %114, %119 in 1 : vector<16x32xbf16>, vector<16x32xbf16>, vector<16x32xbf16>, vector<16x32xbf16> -> vector<16x128xbf16>
    %136 = tpu.concatenate %120, %121, %122, %123, %124, %125, %126, %127, %128, %129, %130, %131, %132, %133, %134, %135 in 0 : vector<16x128xbf16>, vector<16x128xbf16>, vector<16x128xbf16>, vector<16x128xbf16>, vector<16x128xbf16>, vector<16x128xbf16>, vector<16x128xbf16>, vector<16x128xbf16>, vector<16x128xbf16>, vector<16x128xbf16>, vector<16x128xbf16>, vector<16x128xbf16>, vector<16x128xbf16>, vector<16x128xbf16>, vector<16x128xbf16>, vector<16x128xbf16> -> vector<256x128xbf16>
    %c0_32 = arith.constant 0 : index
    %c0_33 = arith.constant 0 : index
    %137 = vector.load %arg7[%c0_32, %c0_33] : memref<128x8xbf16, #tpu.memory_space<vmem>>, vector<128x8xbf16>
    %cst_34 = arith.constant dense<0.000000e+00> : vector<256x8xf32>
    %138 = tpu.matmul %136, %137, %cst_34 {dimension_numbers = #tpu.dot_dimension_numbers<[1], [0], [0], [1], [0, 0, 1, 1], [], []>} : vector<256x128xbf16>, vector<128x8xbf16>, vector<256x8xf32> -> vector<256x8xf32>
    %c0_35 = arith.constant 0 : index
    %c0_36 = arith.constant 0 : index
    %139 = vector.load %arg8[%c0_35, %c0_36] : memref<1x8xf32, #tpu.memory_space<vmem>>, vector<1x8xf32>
    %140 = vector.broadcast %139 : vector<1x8xf32> to vector<256x8xf32>
    %141 = arith.addf %138, %140 : vector<256x8xf32>
    %c0_37 = arith.constant 0 : index
    %c0_38 = arith.constant 0 : index
    %c0_39 = arith.constant 0 : index
    %142 = vector.load %arg9[%c0_37, %c0_38, %c0_39] : memref<1x256x8xf32, #tpu.memory_space<vmem>>, vector<1x256x8xf32>
    %143 = vector.shape_cast %142 : vector<1x256x8xf32> to vector<256x8xf32>
    %144 = vector.shape_cast %141 : vector<256x8xf32> to vector<1x256x8xf32>
    tpu.vector_store %arg9[%c0_37, %c0_38, %c0_39], %144 {strides = array<i32>} : memref<1x256x8xf32, #tpu.memory_space<vmem>>, vector<1x256x8xf32>,
    return
  }
  func.func @transform_0(%arg0: i32) -> (i32, i32, i32) {
    %c0_i32 = arith.constant 0 : i32
    %c0_i32_0 = arith.constant 0 : i32
    %c0_i32_1 = arith.constant 0 : i32
    return %arg0, %c0_i32, %c0_i32_0 : i32, i32, i32
  }
  func.func @transform_1(%arg0: i32) -> (i32, i32) {
    %c0_i32 = arith.constant 0 : i32
    %c0_i32_0 = arith.constant 0 : i32
    %c0_i32_1 = arith.constant 0 : i32
    return %c0_i32, %c0_i32_0 : i32, i32
  }
  func.func @transform_2(%arg0: i32) -> (i32, i32) {
    %c0_i32 = arith.constant 0 : i32
    %c0_i32_0 = arith.constant 0 : i32
    %c0_i32_1 = arith.constant 0 : i32
    return %c0_i32, %c0_i32_0 : i32, i32
  }
  func.func @transform_3(%arg0: i32) -> (i32, i32) {
    %c0_i32 = arith.constant 0 : i32
    %c0_i32_0 = arith.constant 0 : i32
    %c0_i32_1 = arith.constant 0 : i32
    return %c0_i32, %c0_i32_0 : i32, i32
  }
  func.func @transform_4(%arg0: i32) -> (i32, i32) {
    %c0_i32 = arith.constant 0 : i32
    %c0_i32_0 = arith.constant 0 : i32
    %c0_i32_1 = arith.constant 0 : i32
    return %c0_i32, %c0_i32_0 : i32, i32
  }
  func.func @transform_5(%arg0: i32) -> (i32, i32) {
    %c0_i32 = arith.constant 0 : i32
    %c0_i32_0 = arith.constant 0 : i32
    %c0_i32_1 = arith.constant 0 : i32
    return %c0_i32, %c0_i32_0 : i32, i32
  }
  func.func @transform_6(%arg0: i32) -> (i32, i32) {
    %c0_i32 = arith.constant 0 : i32
    %c0_i32_0 = arith.constant 0 : i32
    %c0_i32_1 = arith.constant 0 : i32
    return %c0_i32, %c0_i32_0 : i32, i32
  }
  func.func @transform_7(%arg0: i32) -> (i32, i32) {
    %c0_i32 = arith.constant 0 : i32
    %c0_i32_0 = arith.constant 0 : i32
    %c0_i32_1 = arith.constant 0 : i32
    return %c0_i32, %c0_i32_0 : i32, i32
  }
  func.func @transform_8(%arg0: i32) -> (i32, i32, i32) {
    %c0_i32 = arith.constant 0 : i32
    %c0_i32_0 = arith.constant 0 : i32
    %c0_i32_1 = arith.constant 0 : i32
    return %arg0, %c0_i32, %c0_i32_0 : i32, i32, i32
  }
}

</mosaic_0001>

<bundles_post_ra>
// kernel: tile.19
= control target key start
LH: loop header
LB: loop body
LE: loop exit
PB: predicated region body
PF: predicated region fallthrough
CT: control target
= control target key end

     0   :  { %s6_s8 = smov 3  ;;  %vm8_vm0 = vcmask 523264   ;;  %s31_s9 = smov 64   ;;  %vm15_vm1 = vcmask 1048064   ;;  %s51_s0 = inlined_call_operand.vmem [shape: f32[4,64], index: 0, kind: input, shape index: {}]   ;;  %s52_s1 = inlined_call_operand.vmem [shape: f32[1,256], index: 1, kind: output, shape index: {}]  }
   0x1   :  { %v4_v0 = vld [vmem:[%s51_s0] sm:$0xf]  ;;  %s11_s0 = smov 3 }
   0x2   :  { %5 = vst [vmem:[#allocation1] sm:$0xf] %v4_v0 }
   0x9   :  { %v12_v1 = vld [vmem:[#allocation1 + $0x1] ss:$2 sm:%s11_s0]   ;;  %v7_v2 = vld [vmem:[#allocation1] ss:$2 sm:%s6_s8]  }
   0xa   :  { %13 = vrot.lane.b32.xlu0 %v12_v1, %s31_s9  ;;  %9 = vst.msk [vmem:[#allocation0] ss:$8 sm:$0x3] %vm8_vm0, %v7_v2  }
  0x7c   :  { %v14_v3 = vpop.permute.xlu0 %13  }
  0x7d   :  { %16 = vst.msk [vmem:[#allocation0] ss:$8 sm:$0x3] %vm15_vm1, %v14_v3  }
  0x84   :  { %v19_v4 = vld [vmem:[#allocation0] sm:$0x1]  ;;  %v24_v5 = vld [vmem:[#allocation0 + $0x8] sm:$0x1] }
  0x85   :  { %22 = vst [vmem:[%s52_s1] sm:$0x1] %v19_v4 }
  0x86   :  { %29 = vst [vmem:[%s52_s1 + $0x1] sm:$0x1] %v24_v5 }

// kernel: tile.24
= control target key start
LH: loop header
LB: loop body
LE: loop exit
PB: predicated region body
PF: predicated region fallthrough
CT: control target
= control target key end

     0   :  { %s37_s8 = smov 32   ;;  %s38_s9 = smov 64   ;;  %vm7_vm0 = vcmask 261120   ;;  %vm13_vm1 = vcmask 1048320   ;;  %vm19_vm2 = vcmask 785920   ;;  %vm25_vm3 = vcmask 523520   ;;  %s55_s0 = inlined_call_operand.vmem [shape: f32[4,32], index: 0, kind: input, shape index: {}]   ;;  %s56_s1 = inlined_call_operand.vmem [shape: f32[1,128], index: 1, kind: output, shape index: {}]  }
   0x1   :  { %v4_v0 = vld [vmem:[%s55_s0] sm:$0xf]  ;;  %s36_s0 = smov 96  }
   0x2   :  { %5 = vst [vmem:[#allocation1] sm:$0xf] %v4_v0 }
   0x9   :  { %v10_v1 = vld [vmem:[#allocation1 + $0x3] sm:$0x1]   ;;  %v22_v2 = vld [vmem:[#allocation1 + $0x1] sm:$0x1]   ;;  %v16_v3 = vld [vmem:[#allocation1 + $0x2] sm:$0x1]  }
   0xa   :  { %11 = vrot.lane.b32.xlu0 %v10_v1, %s36_s0  ;;  %23 = vrot.lane.b32.xlu1 %v22_v2, %s37_s8  ;;  %v6_v4 = vld [vmem:[#allocation1] sm:$0x1]  }
   0xb   :  { %8 = vst.msk [vmem:[#allocation0] sm:$0x1] %vm7_vm0, %v6_v4  }
  0x12   :  { %17 = vrot.lane.b32.xlu0 %v16_v3, %s38_s9 }
  0x7c   :  { %v12_v5 = vpop.permute.xlu0 %11   ;;  %v24_v6 = vpop.permute.xlu1 %23  }
  0x7d   :  { %14 = vst.msk [vmem:[#allocation0] sm:$0x1] %vm13_vm1, %v12_v5  }
  0x84   :  { %v18_v7 = vpop.permute.xlu0 %17  }
  0x85   :  { %20 = vst.msk [vmem:[#allocation0] sm:$0x1] %vm19_vm2, %v18_v7  }
  0x86   :  { %26 = vst.msk [vmem:[#allocation0] sm:$0x1] %vm25_vm3, %v24_v6  }
  0x8d   :  { %v29_v8 = vld [vmem:[#allocation0] sm:$0x1] }
  0x8e   :  { %32 = vst [vmem:[%s56_s1] sm:$0x1] %v29_v8 }

// kernel: tile.23
= control target key start
LH: loop header
LB: loop body
LE: loop exit
PB: predicated region body
PF: predicated region fallthrough
CT: control target
= control target key end

     0   :  { %s22_s0 = inlined_call_operand.vmem [shape: f32[32], index: 0, kind: input, shape index: {}]   ;;  %s23_s1 = inlined_call_operand.vmem [shape: f32[4,32], index: 1, kind: output, shape index: {}]  }
   0x1   :  { %v4_v0 = vld [vmem:[%s22_s0] ss:$0 sm:$0xff] }
   0x2   :  { %5 = vst [vmem:[%s23_s1] sm:$0xf] %v4_v0 }

// kernel: tile.18
= control target key start
LH: loop header
LB: loop body
LE: loop exit
PB: predicated region body
PF: predicated region fallthrough
CT: control target
= control target key end

     0   :  { %2 = vsyncpa [#allocation1], 0  ;;  %s48_s8 = smov [#allocation0]   ;;  %s65_s0 = inlined_call_operand.hbm [shape: f32[64], index: 0, kind: input, shape index: {}]   ;;  %s66_s1 = inlined_call_operand.vmem [shape: f32[4,64], index: 1, kind: output, shape index: {}]  }
   0x1   :  { %s8_s0 = sshll.u32 %s65_s0, 4  ;;  %s10_s9 = sshll.u32 %s48_s8, 4  ;;  %s9_s0 = int_to_ptr.hbm [resolvable:$true] %s8_s0  ;;  %s11_s9 = int_to_ptr.vmem [resolvable:$true] %s10_s9 }
   0x2   :  { %13 = dma.hbm_to_vmem [thread:$0]  %s9_s0, 16, %s11_s9, [#allocation1]  }
   0x3   :  { %46 = dma.done.wait [#allocation1], 16  }
   0x4   :  { %47 = vsyncadd [#allocation1], 4294967280  ;;  %v18_v0 = vld [vmem:[#allocation0] ss:$0 sm:$0xff] }
   0x5   :  { %19 = vst [vmem:[%s66_s1] sm:$0xf] %v18_v0 }
   0x6   :  { %20 = vsyncpa [#allocation1], 1 }

// kernel: tile.28
= control target key start
LH: loop header
LB: loop body
LE: loop exit
PB: predicated region body
PF: predicated region fallthrough
CT: control target
= control target key end

     0   :  { %s22_s0 = inlined_call_operand.vmem [shape: f32[2], index: 0, kind: input, shape index: {}]   ;;  %s23_s1 = inlined_call_operand.vmem [shape: f32[4,2], index: 1, kind: output, shape index: {}]  }
   0x1   :  { %v4_v0 = vld [vmem:[%s22_s0] ss:$0 sm:$0xff] }
   0x2   :  { %5 = vst [vmem:[%s23_s1] sm:$0xf] %v4_v0 }

// kernel: tile.29
= control target key start
LH: loop header
LB: loop body
LE: loop exit
PB: predicated region body
PF: predicated region fallthrough
CT: control target
= control target key end

     0   :  { %s37_s8 = smov 2   ;;  %s38_s9 = smov 4   ;;  %vm7_vm0 = vcmask 15360   ;;  %vm13_vm1 = vcmask 64560   ;;  %vm19_vm2 = vcmask 48160   ;;  %vm25_vm3 = vcmask 31760   ;;  %s55_s0 = inlined_call_operand.vmem [shape: f32[4,2], index: 0, kind: input, shape index: {}]   ;;  %s56_s1 = inlined_call_operand.vmem [shape: f32[1,8], index: 1, kind: output, shape index: {}]  }
   0x1   :  { %v4_v0 = vld [vmem:[%s55_s0] sm:$0xf]  ;;  %s36_s0 = smov 6  }
   0x2   :  { %5 = vst [vmem:[#allocation1] sm:$0xf] %v4_v0 }
   0x9   :  { %v10_v1 = vld [vmem:[#allocation1 + $0x3] sm:$0x1]   ;;  %v22_v2 = vld [vmem:[#allocation1 + $0x1] sm:$0x1]   ;;  %v16_v3 = vld [vmem:[#allocation1 + $0x2] sm:$0x1]  }
   0xa   :  { %11 = vrot.lane.b32.xlu0 %v10_v1, %s36_s0  ;;  %23 = vrot.lane.b32.xlu1 %v22_v2, %s37_s8  ;;  %v6_v4 = vld [vmem:[#allocation1] sm:$0x1]  }
   0xb   :  { %8 = vst.msk [vmem:[#allocation0] sm:$0x1] %vm7_vm0, %v6_v4  }
  0x12   :  { %17 = vrot.lane.b32.xlu0 %v16_v3, %s38_s9 }
  0x7c   :  { %v12_v5 = vpop.permute.xlu0 %11   ;;  %v24_v6 = vpop.permute.xlu1 %23  }
  0x7d   :  { %14 = vst.msk [vmem:[#allocation0] sm:$0x1] %vm13_vm1, %v12_v5  }
  0x84   :  { %v18_v7 = vpop.permute.xlu0 %17  }
  0x85   :  { %20 = vst.msk [vmem:[#allocation0] sm:$0x1] %vm19_vm2, %v18_v7  }
  0x86   :  { %26 = vst.msk [vmem:[#allocation0] sm:$0x1] %vm25_vm3, %v24_v6  }
  0x8d   :  { %v29_v8 = vld [vmem:[#allocation0] sm:$0x1] }
  0x8e   :  { %32 = vst [vmem:[%s56_s1] sm:$0x1] %v29_v8 }

// kernel: rec_trac_head4_forward.1
= control target key start
LH: loop header
LB: loop body
LE: loop exit
PB: predicated region body
PF: predicated region fallthrough
CT: control target
= control target key end

     0   :  { %s1607_s27 = smov 0   ;;  %s2084_s0 = inlined_call_operand.vmem [shape: bf16[2,16,32], index: 0, kind: input, shape index: {}]   ;;  %s2085_s1 = inlined_call_operand.vmem [shape: bf16[16,1], index: 1, kind: input, shape index: {}]   ;;  %s2086_s2 = inlined_call_operand.vmem [shape: bf16[128,256], index: 2, kind: input, shape index: {}]   ;;  %s2087_s3 = inlined_call_operand.vmem [shape: f32[1,256], index: 3, kind: input, shape index: {}]   ;;  %s2088_s4 = inlined_call_operand.vmem [shape: bf16[256,128], index: 4, kind: input, shape index: {}]   ;;  %s2089_s5 = inlined_call_operand.vmem [shape: f32[1,128], index: 5, kind: input, shape index: {}]   ;;  %s2090_s6 = inlined_call_operand.vmem [shape: bf16[128,8], index: 6, kind: input, shape index: {}]   ;;  %s2091_s7 = inlined_call_operand.vmem [shape: f32[1,8], index: 7, kind: input, shape index: {}]   ;;  %s2092_s8 = inlined_call_operand.vmem [shape: f32[2,256,8], index: 8, kind: output, shape index: {}]  }
   0x1 LB: > { %s1290_s28 = sadd.s32 4294967295, %s1555_s27   ;;  %p1294_p0 = scmp.ge.s32.totalorder %s1555_s27, 1  ;;  %s1555_s27 = sphi %s1607_s27, %s18_s27  }
   0x2   : > { %p262_p1 = scmp.lt.s32.totalorder %s1555_s27, 3 }
   0x4   : > { %p263_p2 = pnand %p1294_p0, %p262_p1 }
   0x5   : > { %p296_p3 = scmp.lt.s32.totalorder (!%p263_p2), %s1290_s28, 1  ;;  %s1559_s15 = smov (!%p263_p2), 96  }
   0x6   : > { %266 = sbr.rel (%p263_p2) target bundleno = 1037 (0x40d), region = 52  ;;  %s1560_s16 = smov (!%p263_p2), 32  }
   0x7   : > { %s1561_s17 = smov (!%p263_p2), 64  }
   0xb   : > { %v307_v0 = vld [vmem:[%s2085_s1] sm:$0xf]  ;;  %v1557_v1 = vmov 0   ;;  %v308_v2 = vld [vmem:[%s2085_s1 + $0x4] sm:$0xf]  ;;  %s2098_s28 = smov (!%p296_p3, %s1290_s28), 1 }
   0xc   : > { %1546 = vset.pattern.permute.xlu0 %v1557_v1  ;;  %s1466_s11 = sshll.u32 %s2098_s28, 3  ;;  %v1558_v6 = vmov 839922192   ;;  %vm355_vm0 = vcmask 1045504   ;;  %vm364_vm1 = vsmask.f32 5376 }
   0xd   : > { %330 = vperm.xlu0 %1546, %v307_v0   ;;  %s300_s14 = scalar_lea.vmem %s2084_s0, %s1466_s11  ;;  %v334_v7 = vunpack.c.l.s4 %v1558_v6  ;;  %vm324_vm2 = vcmask 1047552   ;;  %vm325_vm3 = vsmask.f32 7424  ;;  %vm1632_vm4 = vmand %vm355_vm0, %vm364_vm1  ;;  %v1361_v44 = vld [vmem:[%s2086_s2 + $0x70] sm:$0xf]  ;;  %vm390_vm6 = vcmask 261120  }
   0xe   : > { %v1627_v3 = vld [vmem:[%s300_s14] sm:$0xff]  ;;  %vm1636_vm5 = vmand %vm324_vm2, %vm325_vm3  ;;  %v1484_v45 = vld [vmem:[%s2086_s2 + $0x74] sm:$0xf0]  ;;  %vm393_vm7 = vcmask 523264   ;;  %vm396_vm8 = vcmask 785408   ;;  %s1467_s12 = sshll.u32 %s2098_s28, 8 }
   0xf   : > { %v317_v4 = vshrl.u32 %v1627_v3, 16  ;;  %v319_v5 = vshll.u32 %v1627_v3, 16  ;;  %v335_v11 = vunpack.c.0.s8 %v334_v7  ;;  %v354_v42 = vrot.slane %v1627_v3, 2  ;;  %v1483_v46 = vld [vmem:[%s2086_s2 + $0x74] sm:$0xf]  ;;  %s1894_s20 = scalar_lea.vmem %s2092_s8, %s1467_s12 }
  0x10   : > { %v1362_v47 = vor.u32 %v1484_v45, %v1361_v44  ;;  %v1363_v48 = vld [vmem:[%s2086_s2 + $0x78] sm:$0xf0]  ;;  %v1353_v49 = vld [vmem:[%s2086_s2 + $0x60] sm:$0xf]  ;;  %v1482_v50 = vld [vmem:[%s2086_s2 + $0x64] sm:$0xf0] }
  0x11   : > { %v359_v8 = vrot.slane %v317_v4, 2  ;;  %v360_v9 = vrot.slane %v319_v5, 3  ;;  %v321_v10 = vrot.slane %v319_v5, 1  ;;  %v358_v43 = vsel %vm355_vm0, %v354_v42, 0  ;;  %v1481_v52 = vld [vmem:[%s2086_s2 + $0x64] sm:$0xf] }
  0x12   : > { %v1366_v51 = vor.u32 %v1483_v46, %v1363_v48  ;;  %v1355_v53 = vld [vmem:[%s2086_s2 + $0x68] sm:$0xf0]  ;;  %502 = vmatpush.bf16.msra.mxu0 %v1362_v47  ;;  %v1354_v54 = vor.u32 %v1482_v50, %v1353_v49  ;;  %v1345_v56 = vld [vmem:[%s2086_s2 + $0x50] sm:$0xf]  ;;  %v1480_v57 = vld [vmem:[%s2086_s2 + $0x54] sm:$0xf0] }
  0x13   : > { %v361_v12 = vor.u32 %v360_v9, %v359_v8  ;;  %v322_v14 = vor.u32 %v321_v10, %v317_v4  ;;  %v1358_v55 = vor.u32 %v1481_v52, %v1355_v53  ;;  %v1479_v58 = vld [vmem:[%s2086_s2 + $0x54] sm:$0xf]  ;;  %v1347_v59 = vld [vmem:[%s2086_s2 + $0x58] sm:$0xf0]  ;;  %v1346_v60 = vor.u32 %v1480_v57, %v1345_v56  ;;  %v1337_v62 = vld [vmem:[%s2086_s2 + $0x40] sm:$0xf] }
  0x14   : > { %516 = vmatpush.bf16.msra.mxu1 %v1366_v51  ;;  %v1350_v61 = vor.u32 %v1479_v58, %v1347_v59  ;;  %v1478_v63 = vld [vmem:[%s2086_s2 + $0x44] sm:$0xf0]  ;;  %v1477_v0 = vld [vmem:[%s2086_s2 + $0x44] sm:$0xf]  ;;  %v1339_v1 = vld [vmem:[%s2086_s2 + $0x48] sm:$0xf0] }
  0x15   : > { %339 = vperm.xlu0 %1546, %v308_v2   ;;  %v366_v18 = vsel %vm1632_vm4, %v361_v12, 0  ;;  %v327_v19 = vsel %vm1636_vm5, %v322_v14, 0  ;;  %v1338_v2 = vor.u32 %v1478_v63, %v1337_v62  ;;  %v1342_v4 = vor.u32 %v1477_v0, %v1339_v1  ;;  %v1329_v5 = vld [vmem:[%s2086_s2 + $0x30] sm:$0xf]  ;;  %v1476_v6 = vld [vmem:[%s2086_s2 + $0x34] sm:$0xf0] }
  0x16   : > { %v367_v21 = vunpack.c.l.bf16 %v366_v18  ;;  %v346_v22 = vunpack.c.l.bf16 %v327_v19  ;;  %v368_v24 = vunpack.c.h.bf16 %v366_v18  ;;  %v347_v27 = vunpack.c.h.bf16 %v327_v19  ;;  %503 = vmatpush.bf16.msra.mxu0 %v1354_v54  ;;  %v1475_v7 = vld [vmem:[%s2086_s2 + $0x34] sm:$0xf]  ;;  %v1331_v8 = vld [vmem:[%s2086_s2 + $0x38] sm:$0xf0]  ;;  %v1474_v12 = vld [vmem:[%s2086_s2 + $0x24] sm:$0xf0] }
  0x17   : > { %v1330_v9 = vor.u32 %v1476_v6, %v1329_v5  ;;  %v1334_v10 = vor.u32 %v1475_v7, %v1331_v8  ;;  %v1473_v14 = vld [vmem:[%s2086_s2 + $0x24] sm:$0xf]  ;;  %v1313_v19 = vld [vmem:[%s2086_s2 + $0x10] sm:$0xf]  ;;  %v1496_v47 = vld [vmem:[%s2088_s4 + $0x58] sm:$0xff]  ;;  %vm1202_vm9 = vcmask 64512  }
  0x18   : > { %517 = vmatpush.bf16.msra.mxu1 %v1358_v55  ;;  %v1489_v45 = vld [vmem:[%s2088_s4 + $0x20] sm:$0xff]  ;;  %v1487_v48 = vld [vmem:[%s2088_s4 + $0x10] sm:$0xff]  ;;  %v1486_v50 = vld [vmem:[%s2088_s4 + $0x8] sm:$0xff] }
  0x19   : > { %v1497_v46 = vld [vmem:[%s2088_s4 + $0x60] sm:$0xff]  ;;  %v1495_v49 = vld [vmem:[%s2088_s4 + $0x50] sm:$0xff]  ;;  %v1494_v51 = vld [vmem:[%s2088_s4 + $0x48] sm:$0xff] }
  0x1a   : > { %504 = vmatpush.bf16.msra.mxu0 %v1346_v60  ;;  %v1485_v52 = vld [vmem:[%s2088_s4] sm:$0xff] }
  0x1b   : > { %v1493_v53 = vld [vmem:[%s2088_s4 + $0x40] sm:$0xff] }
  0x1c   : > { %518 = vmatpush.bf16.msra.mxu1 %v1350_v61  ;;  %v416_v54 = vld [vmem:[%s2087_s3] sm:$0x3] }
  0x1d   : > { %v418_v55 = vperm.slane %v416_v54, 0  ;;  %v419_v56 = vperm.slane %v416_v54, 1 }
  0x1e   : > { %505 = vmatpush.bf16.msra.mxu0 %v1338_v2 }
  0x20   : > { %519 = vmatpush.bf16.msra.mxu1 %v1342_v4 }
  0x22   : > { %506 = vmatpush.bf16.msra.mxu0 %v1330_v9 }
  0x24   : > { %520 = vmatpush.bf16.msra.mxu1 %v1334_v10 }
  0x7f   : > { %v331_v16 = vpop.permute.xlu0 %330 }
  0x80   : > { %v336_v17 = vperm.slane %v331_v16, %v335_v11  ;;  %v1323_v16 = vld [vmem:[%s2086_s2 + $0x28] sm:$0xf0] }
  0x81   : > { %v1326_v18 = vor.u32 %v1473_v14, %v1323_v16 }
  0x82   : > { %v1644_v20 = vunpack.c.l.bf16 %v336_v17 }
  0x83   : > { %521 = vmatpush.bf16.msra.mxu1 %v1326_v18 }
  0x84   : > { %v369_v26 = vmul.f32 %v367_v21, %v1644_v20  ;;  %v350_v28 = vmul.f32 %v1644_v20, %v346_v22  ;;  %v1472_v21 = vld [vmem:[%s2086_s2 + $0x14] sm:$0xf0]  ;;  %v1471_v22 = vld [vmem:[%s2086_s2 + $0x14] sm:$0xf] }
  0x86   : > { %v371_v31 = vpack.c.bf16 %v369_v26, %v369_v26  ;;  %v352_v33 = vpack.c.bf16 %v350_v28, %v350_v28  ;;  %v1470_v26 = vld [vmem:[%s2086_s2 + $0x4] sm:$0xf0]  ;;  %v1469_v28 = vld [vmem:[%s2086_s2 + $0x4] sm:$0xf] }
  0x87   : > { %v340_v23 = vpop.permute.xlu0 %339 }
  0x88   : > { %v345_v25 = vperm.slane %v340_v23, %v335_v11  ;;  %v385_v36 = vunpack.c.l.b16 %v371_v31  ;;  %v375_v38 = vunpack.c.l.b16 %v352_v33  ;;  %v1321_v11 = vld [vmem:[%s2086_s2 + $0x20] sm:$0xf]  ;;  %v1314_v23 = vor.u32 %v1472_v21, %v1313_v19  ;;  %v1492_v33 = vld [vmem:[%s2088_s4 + $0x38] sm:$0xff] }
  0x89   : > { %v1322_v17 = vor.u32 %v1474_v12, %v1321_v11  ;;  %763 = vmatpush.bf16.msra.mxu2 %v1492_v33 }
  0x8a   : > { %v1648_v29 = vunpack.c.l.bf16 %v345_v25  ;;  %v1305_v25 = vld [vmem:[%s2086_s2] sm:$0xf] }
  0x8b   : > { %507 = vmatpush.bf16.msra.mxu0 %v1322_v17  ;;  %v1306_v31 = vor.u32 %v1470_v26, %v1305_v25 }
  0x8c   : > { %v370_v30 = vmul.f32 %v368_v24, %v1648_v29  ;;  %v351_v32 = vmul.f32 %v1648_v29, %v347_v27  ;;  %v1315_v24 = vld [vmem:[%s2086_s2 + $0x18] sm:$0xf0] }
  0x8d   : > { %v1318_v27 = vor.u32 %v1471_v22, %v1315_v24 }
  0x8e   : > { %v372_v34 = vpack.c.bf16 %v370_v30, %v370_v30  ;;  %v353_v35 = vpack.c.bf16 %v351_v32, %v351_v32  ;;  %v1307_v30 = vld [vmem:[%s2086_s2 + $0x8] sm:$0xf0] }
  0x8f   : > { %508 = vmatpush.bf16.msra.mxu0 %v1314_v23  ;;  %522 = vmatpush.bf16.msra.mxu1 %v1318_v27  ;;  %v1310_v32 = vor.u32 %v1469_v28, %v1307_v30 }
  0x90   : > { %v386_v37 = vunpack.c.l.b16 %v372_v34  ;;  %v376_v39 = vunpack.c.l.b16 %v353_v35  ;;  %v1500_v34 = vld [vmem:[%s2088_s4 + $0x78] sm:$0xff]  ;;  %v1491_v35 = vld [vmem:[%s2088_s4 + $0x30] sm:$0xff] }
  0x91   : > { %792 = vmatpush.bf16.msra.mxu3 %v1500_v34  ;;  %764 = vmatpush.bf16.msra.mxu2 %v1491_v35 }
  0x92   : > { %v387_v40 = vpack.c.b16 %v386_v37, %v385_v36  ;;  %v377_v41 = vpack.c.b16 %v376_v39, %v375_v38  ;;  %v1499_v36 = vld [vmem:[%s2088_s4 + $0x70] sm:$0xff]  ;;  %v1490_v37 = vld [vmem:[%s2088_s4 + $0x28] sm:$0xff] }
  0x93   : > { %509 = vmatpush.bf16.msra.mxu0 %v1306_v31  ;;  %523 = vmatpush.bf16.msra.mxu1 %v1310_v32  ;;  %v1498_v38 = vld [vmem:[%s2088_s4 + $0x68] sm:$0xff] }
  0x94   : > { %388 = vrot.lane.b32.xlu2 %v387_v40, %s1559_s15  ;;  %378 = vrot.lane.b32.xlu1 %v377_v41, %s1560_s16 }
  0x95   : > { %793 = vmatpush.bf16.msra.mxu3 %v1499_v36  ;;  %765 = vmatpush.bf16.msra.mxu2 %v1490_v37 }
  0x99   : > { %794 = vmatpush.bf16.msra.mxu3 %v1498_v38  ;;  %766 = vmatpush.bf16.msra.mxu2 %v1489_v45 }
  0x9c   : > { %381 = vrot.lane.b32.xlu1 %v358_v43, %s1561_s17 }
  0x9d   : > { %795 = vmatpush.bf16.msra.mxu3 %v1497_v46 }
  0xa1   : > { %796 = vmatpush.bf16.msra.mxu3 %v1496_v47 }
  0xa5   : > { %797 = vmatpush.bf16.msra.mxu3 %v1495_v49 }
  0xa9   : > { %798 = vmatpush.bf16.msra.mxu3 %v1494_v51 }
  0xad   : > { %799 = vmatpush.bf16.msra.mxu3 %v1493_v53 }
  0xee   : > { %v389_v42 = vpop.permute.xlu2 %388 }
 0x106   : > { %v379_v39 = vpop.permute.xlu1 %378 }
 0x107   : > { %v392_v40 = vsel %vm390_vm6, %v1627_v3, %v379_v39  ;;  %v1488_v3 = vld [vmem:[%s2088_s4 + $0x18] sm:$0xff] }
 0x108   : > { %767 = vmatpush.bf16.msra.mxu2 %v1488_v3 }
 0x10c   : > { %768 = vmatpush.bf16.msra.mxu2 %v1487_v48 }
 0x10e   : > { %v382_v41 = vpop.permute.xlu1 %381 }
 0x10f   : > { %v395_v43 = vsel %vm393_vm7, %v392_v40, %v382_v41 }
 0x110   : > { %v398_v44 = vsel %vm396_vm8, %v395_v43, %v389_v42  ;;  %769 = vmatpush.bf16.msra.mxu2 %v1486_v50 }
 0x111   : > { %510 = vmatmul.bf16.vlgmr.msra.gmra.mxu0 %v398_v44  ;;  %524 = vmatmul.bf16.vlgmr.msra.gmra.mxu1 %v398_v44 }
 0x114   : > { %770 = vmatpush.bf16.msra.mxu2 %v1485_v52 }
 0x18e   : > { %v511_v57 = vpop.f32.mrf.mxu0  ;;  %v525_v58 = vpop.f32.mrf.mxu1 }
 0x18f   : > { %v512_v59 = vadd.f32 %v511_v57, %v418_v55  ;;  %v526_v60 = vadd.f32 %v525_v58, %v419_v56 }
 0x191   : > { %v530_v61 = vmax.f32 %v512_v59, 0.0  ;;  %v531_v62 = vmax.f32 %v526_v60, 0.0  ;;  %v1508_v60 = vld [vmem:[%s2090_s6 + $0x38] sm:$0xff] }
 0x192   : > { %1113 = vmatpush.bf16.msrb.mxu0 %v1508_v60  ;;  %1510 = vmatpush.bf16.msrb.mxu2 %v1508_v60 }
 0x193   : > { %v534_v4 = vpack.c.bf16 %v531_v62, %v530_v61  ;;  %v1507_v61 = vld [vmem:[%s2090_s6 + $0x30] sm:$0xff]  ;;  %1511 = vmatpush.bf16.msrb.mxu3 %v1508_v60  ;;  %1509 = vmatpush.bf16.msrb.mxu1 %v1508_v60  ;;  %v1506_v62 = vld [vmem:[%s2090_s6 + $0x28] sm:$0xff] }
 0x195   : > { %v538_v8 = vunpack.c.l.b16 %v534_v4  ;;  %v556_v9 = vunpack.c.h.b16 %v534_v4  ;;  %v1502_v4 = vld [vmem:[%s2090_s6 + $0x8] sm:$0xff] }
 0x196   : > { %v513_v63 = vpop.f32.mrf.mxu0  ;;  %v527_v0 = vpop.f32.mrf.mxu1  ;;  %1114 = vmatpush.bf16.msrb.mxu0 %v1507_v61  ;;  %1513 = vmatpush.bf16.msrb.mxu2 %v1507_v61 }
 0x197   : > { %v514_v1 = vadd.f32 %v513_v63, %v418_v55  ;;  %v528_v2 = vadd.f32 %v527_v0, %v419_v56  ;;  %1514 = vmatpush.bf16.msrb.mxu3 %v1507_v61  ;;  %1512 = vmatpush.bf16.msrb.mxu1 %v1507_v61  ;;  %v1505_v63 = vld [vmem:[%s2090_s6 + $0x20] sm:$0xff]  ;;  %v1504_v0 = vld [vmem:[%s2090_s6 + $0x18] sm:$0xff] }
 0x199   : > { %v532_v5 = vmax.f32 %v514_v1, 0.0  ;;  %v533_v6 = vmax.f32 %v528_v2, 0.0  ;;  %v1503_v2 = vld [vmem:[%s2090_s6 + $0x10] sm:$0xff] }
 0x19a   : > { %1115 = vmatpush.bf16.msrb.mxu0 %v1506_v62  ;;  %1516 = vmatpush.bf16.msrb.mxu2 %v1506_v62 }
 0x19b   : > { %v535_v7 = vpack.c.bf16 %v533_v6, %v532_v5  ;;  %1515 = vmatpush.bf16.msrb.mxu1 %v1506_v62  ;;  %1517 = vmatpush.bf16.msrb.mxu3 %v1506_v62 }
 0x19d   : > { %v539_v10 = vunpack.c.l.b16 %v535_v7  ;;  %v557_v11 = vunpack.c.h.b16 %v535_v7 }
 0x19e   : > { %1116 = vmatpush.bf16.msrb.mxu0 %v1505_v63  ;;  %1519 = vmatpush.bf16.msrb.mxu2 %v1505_v63 }
 0x19f   : > { %v1808_v12 = vpack.c.b16 %v539_v10, %v538_v8  ;;  %v1810_v14 = vpack.c.b16 %v557_v11, %v556_v9  ;;  %1518 = vmatpush.bf16.msrb.mxu1 %v1505_v63  ;;  %1520 = vmatpush.bf16.msrb.mxu3 %v1505_v63  ;;  %v1501_v8 = vld [vmem:[%s2090_s6] sm:$0xff] }
 0x1a0   : > { %v1868_v9 = vld [vmem:[%s2089_s5] ss:$0 sm:$0xff] }
 0x1a1   : > { %599 = vrot.lane.b32.xlu1 %v1810_v14, %s1561_s17  ;;  %800 = vmatmul.bf16.vlgmr.msra.gmra.mxu3 %v1810_v14  ;;  %v562_v16 = vshll.u32 %v1810_v14, 16  ;;  %v542_v17 = vshrl.u32 %v1808_v12, 16  ;;  %v544_v18 = vshll.u32 %v1808_v12, 16  ;;  %v560_v19 = vshrl.u32 %v1810_v14, 16 }
 0x1a2   : > { %590 = vrot.lane.b32.xlu2 %v1808_v12, %s1561_s17  ;;  %771 = vmatmul.bf16.vlgmr.msra.gmra.mxu2 %v1808_v12  ;;  %v574_v58 = vrot.slane %v1808_v12, 2 }
 0x1a3   : > { %v564_v21 = vrot.slane %v562_v16, 1  ;;  %v577_v22 = vrot.slane %v542_v17, 2  ;;  %v578_v23 = vrot.slane %v544_v18, 3  ;;  %v546_v24 = vrot.slane %v544_v18, 1  ;;  %1117 = vmatpush.bf16.msrb.mxu0 %v1504_v0  ;;  %1522 = vmatpush.bf16.msrb.mxu2 %v1504_v0 }
 0x1a4   : > { %v576_v59 = vsel %vm355_vm0, %v574_v58, 0  ;;  %1521 = vmatpush.bf16.msrb.mxu1 %v1504_v0  ;;  %1523 = vmatpush.bf16.msrb.mxu3 %v1504_v0 }
 0x1a5   : > { %v565_v25 = vor.u32 %v564_v21, %v560_v19  ;;  %v579_v26 = vor.u32 %v578_v23, %v577_v22  ;;  %v547_v27 = vor.u32 %v546_v24, %v542_v17 }
 0x1a7   : > { %v567_v28 = vsel %vm1636_vm5, %v565_v25, 0  ;;  %v581_v30 = vsel %vm1632_vm4, %v579_v26, 0  ;;  %v549_v31 = vsel %vm1636_vm5, %v547_v27, 0  ;;  %1118 = vmatpush.bf16.msrb.mxu0 %v1503_v2  ;;  %1525 = vmatpush.bf16.msrb.mxu2 %v1503_v2 }
 0x1a8   : > { %v568_v32 = vunpack.c.l.bf16 %v567_v28  ;;  %v569_v33 = vunpack.c.h.bf16 %v567_v28  ;;  %v582_v34 = vunpack.c.l.bf16 %v581_v30  ;;  %v583_v35 = vunpack.c.h.bf16 %v581_v30  ;;  %1524 = vmatpush.bf16.msrb.mxu1 %v1503_v2  ;;  %1526 = vmatpush.bf16.msrb.mxu3 %v1503_v2 }
 0x1a9   : > { %v550_v36 = vunpack.c.l.bf16 %v549_v31  ;;  %v551_v37 = vunpack.c.h.bf16 %v549_v31 }
 0x1aa   : > { %v570_v38 = vmul.f32 %v568_v32, %v1644_v20  ;;  %v571_v39 = vmul.f32 %v569_v33, %v1648_v29  ;;  %v584_v40 = vmul.f32 %v582_v34, %v1644_v20  ;;  %v585_v41 = vmul.f32 %v583_v35, %v1648_v29 }
 0x1ab   : > { %v552_v42 = vmul.f32 %v550_v36, %v1644_v20  ;;  %v553_v43 = vmul.f32 %v551_v37, %v1648_v29  ;;  %1119 = vmatpush.bf16.msrb.mxu0 %v1502_v4  ;;  %1528 = vmatpush.bf16.msrb.mxu2 %v1502_v4 }
 0x1ac   : > { %v572_v44 = vpack.c.bf16 %v570_v38, %v570_v38  ;;  %v573_v45 = vpack.c.bf16 %v571_v39, %v571_v39  ;;  %v586_v46 = vpack.c.bf16 %v584_v40, %v584_v40  ;;  %v587_v3 = vpack.c.bf16 %v585_v41, %v585_v41  ;;  %1527 = vmatpush.bf16.msrb.mxu1 %v1502_v4 }
 0x1ad   : > { %v554_v47 = vpack.c.bf16 %v552_v42, %v552_v42  ;;  %v555_v48 = vpack.c.bf16 %v553_v43, %v553_v43  ;;  %1529 = vmatpush.bf16.msrb.mxu3 %v1502_v4  ;;  %v1889_v42 = vld [vmem:[%s2091_s7] ss:$0 sm:$0xff] }
 0x1ae   : > { %v603_v49 = vunpack.c.l.b16 %v572_v44  ;;  %v604_v50 = vunpack.c.l.b16 %v573_v45  ;;  %v622_v51 = vunpack.c.l.b16 %v586_v46  ;;  %v623_v52 = vunpack.c.l.b16 %v587_v3 }
 0x1af   : > { %v594_v53 = vunpack.c.l.b16 %v554_v47  ;;  %v595_v54 = vunpack.c.l.b16 %v555_v48  ;;  %1120 = vmatpush.bf16.msrb.mxu0 %v1501_v8  ;;  %1531 = vmatpush.bf16.msrb.mxu2 %v1501_v8 }
 0x1b0   : > { %v605_v55 = vpack.c.b16 %v604_v50, %v603_v49  ;;  %v624_v56 = vpack.c.b16 %v623_v52, %v622_v51  ;;  %1530 = vmatpush.bf16.msrb.mxu1 %v1501_v8 }
 0x1b1   : > { %v596_v57 = vpack.c.b16 %v595_v54, %v594_v53  ;;  %1532 = vmatpush.bf16.msrb.mxu3 %v1501_v8 }
 0x1b2   : > { %606 = vrot.lane.b32.xlu2 %v605_v55, %s1561_s17  ;;  %625 = vrot.lane.b32.xlu1 %v624_v56, %s1561_s17 }
 0x1b3   : > { %597 = vrot.lane.b32.xlu0 %v596_v57, %s1561_s17 }
 0x1bb   : > { %618 = vrot.lane.b32.xlu0 %v576_v59, %s1561_s17 }
 0x1fc   : > { %v591_v1 = vpop.permute.xlu2 %590 }
 0x20c   : > { %v607_v5 = vpop.permute.xlu2 %606 }
 0x213   : > { %v600_v6 = vpop.permute.xlu1 %599 }
 0x214   : > { %v614_v7 = vsel %vm393_vm7, %v600_v6, %v607_v5 }
 0x215   : > { %805 = vmatmul.bf16.gmra.mxu3 %v614_v7 }
 0x224   : > { %v801_v10 = vpop.f32.mrf.mxu3  ;;  %v626_v28 = vpop.permute.xlu1 %625 }
 0x225   : > { %v772_v11 = vpop.f32.mrf.mxu2  ;;  %v598_v12 = vpop.permute.xlu0 %597  ;;  %1431 = vmatmul.msk.bf16.gmra.mxu3 %vm355_vm0, %v574_v58 }
 0x226   : > { %v773_v16 = vadd.f32 %v1868_v9, %v772_v11  ;;  %v610_v17 = vsel %vm393_vm7, %v591_v1, %v598_v12 }
 0x227   : > { %776 = vmatmul.bf16.gmra.mxu2 %v610_v17 }
 0x228   : > { %v802_v18 = vadd.f32 %v801_v10, %v773_v16 }
 0x22a   : > { %v821_v21 = vmax.f32 %v802_v18, 0.0 }
 0x22c   : > { %v803_v23 = vpop.f32.mrf.mxu3  ;;  %v829_v26 = vpack.c.bf16 %v821_v21, %v821_v21 }
 0x22d   : > { %v774_v19 = vpop.f32.mrf.mxu2  ;;  %v619_v25 = vpop.permute.xlu0 %618 }
 0x22e   : > { %v775_v22 = vadd.f32 %v1868_v9, %v774_v19  ;;  %v629_v31 = vsel %vm393_vm7, %v619_v25, %v626_v28  ;;  %v839_v32 = vunpack.c.l.b16 %v829_v26 }
 0x230   : > { %v804_v24 = vadd.f32 %v803_v23, %v775_v22 }
 0x232   : > { %v822_v27 = vmax.f32 %v804_v24, 0.0 }
 0x234   : > { %v830_v30 = vpack.c.bf16 %v822_v27, %v822_v27 }
 0x235   : > { %815 = vmatmul.bf16.gmra.mxu3 %v629_v31 }
 0x236   : > { %v840_v33 = vunpack.c.l.b16 %v830_v30 }
 0x237   : > { %781 = vmatmul.bf16.gmra.mxu2 %v1810_v14 }
 0x238   : > { %v1876_v34 = vpack.c.b16 %v840_v33, %v839_v32 }
 0x23a   : > { %1121 = vmatmul.bf16.vlgmr.msrb.gmra.mxu0 %v1876_v34  ;;  %940 = vrot.lane.b32.xlu0 %v1876_v34, %s1560_s16  ;;  %v845_v62 = vshll.u32 %v1876_v34, 16  ;;  %v843_v10 = vshrl.u32 %v1876_v34, 16 }
 0x23c   : > { %v847_v2 = vrot.slane %v845_v62, 1 }
 0x23e   : > { %v848_v12 = vor.u32 %v847_v2, %v843_v10 }
 0x240   : > { %v850_v18 = vsel %vm1636_vm5, %v848_v12, 0 }
 0x241   : > { %v851_v25 = vunpack.c.l.bf16 %v850_v18  ;;  %v852_v28 = vunpack.c.h.bf16 %v850_v18 }
 0x242   : > { %902 = vrot.lane.b32.xlu0 %v1876_v34, %s1559_s15 }
 0x243   : > { %v853_v33 = vmul.f32 %v851_v25, %v1644_v20 }
 0x247   : > { %786 = vmatmul.bf16.gmra.mxu2 %v614_v7 }
 0x298   : > { %v806_v35 = vpop.f32.mrf.mxu3 }
 0x2a0   : > { %v808_v38 = vpop.f32.mrf.mxu3 }
 0x2a8   : > { %v811_v44 = vpop.f32.mrf.mxu3 }
 0x2aa   : > { %v777_v36 = vpop.f32.mrf.mxu2 }
 0x2ab   : > { %v778_v37 = vadd.f32 %v1868_v9, %v777_v36  ;;  %v854_v36 = vmul.f32 %v852_v28, %v1648_v29 }
 0x2ad   : > { %v807_v39 = vadd.f32 %v806_v35, %v778_v37  ;;  %v877_v37 = vrot.slane %v1876_v34, 2 }
 0x2af   : > { %v823_v41 = vmax.f32 %v807_v39, 0.0 }
 0x2b0   : > { %v813_v56 = vpop.f32.mrf.mxu3 }
 0x2b1   : > { %v831_v45 = vpack.c.bf16 %v823_v41, %v823_v41 }
 0x2b2   : > { %v779_v40 = vpop.f32.mrf.mxu2 }
 0x2b3   : > { %v780_v14 = vadd.f32 %v1868_v9, %v779_v40  ;;  %v882_v50 = vunpack.c.l.b16 %v831_v45  ;;  %v855_v40 = vpack.c.bf16 %v853_v33, %v853_v33  ;;  %v879_v45 = vsel %vm355_vm0, %v877_v37, 0 }
 0x2b5   : > { %v809_v43 = vadd.f32 %v808_v38, %v780_v14  ;;  %v856_v14 = vpack.c.bf16 %v854_v36, %v854_v36 }
 0x2b7   : > { %v824_v46 = vmax.f32 %v809_v43, 0.0  ;;  %v1122_v3 = vpop.f32.mrf.mxu0 }
 0x2b8   : > { %v1123_v47 = vadd.f32 %v1889_v42, %v1122_v3  ;;  %v816_v4 = vpop.f32.mrf.mxu3  ;;  %v921_v3 = vunpack.c.l.b16 %v856_v14 }
 0x2b9   : > { %v832_v48 = vpack.c.bf16 %v824_v46, %v824_v46  ;;  %v920_v46 = vunpack.c.l.b16 %v855_v40 }
 0x2ba   : > { %1203 = vst.msk [vmem:[%s1894_s20] sm:$0xff] %vm1202_vm9, %v1123_v47  ;;  %v782_v49 = vpop.f32.mrf.mxu2 }
 0x2bb   : > { %v883_v51 = vunpack.c.l.b16 %v832_v48  ;;  %v783_v52 = vadd.f32 %v1868_v9, %v782_v49  ;;  %v888_v48 = vrot.slane %v843_v10, 2  ;;  %v889_v49 = vrot.slane %v845_v62, 3 }
 0x2bd   : > { %v1900_v53 = vpack.c.b16 %v883_v51, %v882_v50  ;;  %v812_v54 = vadd.f32 %v811_v44, %v783_v52  ;;  %v922_v50 = vpack.c.b16 %v921_v3, %v920_v46 }
 0x2bf   : > { %v1124_v55 = vpop.f32.mrf.mxu0  ;;  %916 = vrot.lane.b32.xlu2 %v1900_v53, %s1559_s15  ;;  %v825_v59 = vmax.f32 %v812_v54, 0.0  ;;  %v890_v54 = vor.u32 %v889_v49, %v888_v48 }
 0x2c0   : > { %v1125_v57 = vadd.f32 %v1889_v42, %v1124_v55  ;;  %v818_v24 = vpop.f32.mrf.mxu3 }
 0x2c1   : > { %v833_v63 = vpack.c.bf16 %v825_v59, %v825_v59 }
 0x2c2   : > { %1204 = vst.msk [vmem:[%s1894_s20 + $0x8] sm:$0xff] %vm1202_vm9, %v1125_v57  ;;  %v784_v58 = vpop.f32.mrf.mxu2  ;;  %v885_v57 = vrot.slane %v1900_v53, 2 }
 0x2c3   : > { %v785_v60 = vadd.f32 %v1868_v9, %v784_v58  ;;  %v859_v6 = vunpack.c.l.b16 %v833_v63  ;;  %v892_v58 = vsel %vm1632_vm4, %v890_v54, 0 }
 0x2c4   : > { %v887_v62 = vsel %vm355_vm0, %v885_v57, 0 }
 0x2c5   : > { %v814_v61 = vadd.f32 %v813_v56, %v785_v60  ;;  %v893_v60 = vunpack.c.l.bf16 %v892_v58 }
 0x2c7   : > { %v826_v0 = vmax.f32 %v814_v61, 0.0  ;;  %v894_v61 = vunpack.c.h.bf16 %v892_v58  ;;  %v895_v63 = vmul.f32 %v893_v60, %v1644_v20 }
 0x2c9   : > { %v834_v1 = vpack.c.bf16 %v826_v0, %v826_v0  ;;  %v896_v0 = vmul.f32 %v894_v61, %v1648_v29 }
 0x2ca   : > { %v787_v5 = vpop.f32.mrf.mxu2 }
 0x2cb   : > { %v860_v7 = vunpack.c.l.b16 %v834_v1  ;;  %v788_v8 = vadd.f32 %v1868_v9, %v787_v5  ;;  %v897_v1 = vpack.c.bf16 %v895_v63, %v895_v63  ;;  %v898_v2 = vpack.c.bf16 %v896_v0, %v896_v0 }
 0x2cd   : > { %v1911_v11 = vpack.c.b16 %v860_v7, %v859_v6  ;;  %v817_v16 = vadd.f32 %v816_v4, %v788_v8  ;;  %v1034_v13 = vunpack.c.l.b16 %v897_v1  ;;  %v1035_v4 = vunpack.c.l.b16 %v898_v2  ;;  %v941_v6 = vpop.permute.xlu0 %940 }
 0x2cf   : > { %942 = vrot.lane.b32.xlu1 %v1911_v11, %s1560_s16  ;;  %v865_v17 = vshll.u32 %v1911_v11, 16  ;;  %v827_v22 = vmax.f32 %v817_v16, 0.0  ;;  %v863_v26 = vshrl.u32 %v1911_v11, 16  ;;  %v1036_v5 = vpack.c.b16 %v1035_v4, %v1034_v13 }
 0x2d1   : > { %v867_v21 = vrot.slane %v865_v17, 1  ;;  %v835_v31 = vpack.c.bf16 %v827_v22, %v827_v22 }
 0x2d2   : > { %v789_v19 = vpop.f32.mrf.mxu2 }
 0x2d3   : > { %v790_v23 = vadd.f32 %v1868_v9, %v789_v19  ;;  %v868_v30 = vor.u32 %v867_v21, %v863_v26  ;;  %v946_v38 = vunpack.c.l.b16 %v835_v31 }
 0x2d5   : > { %v819_v27 = vadd.f32 %v818_v24, %v790_v23  ;;  %v870_v9 = vsel %vm1636_vm5, %v868_v30, 0  ;;  %v903_v17 = vpop.permute.xlu0 %902 }
 0x2d6   : > { %v871_v43 = vunpack.c.l.bf16 %v870_v9  ;;  %v872_v44 = vunpack.c.h.bf16 %v870_v9 }
 0x2d7   : > { %v828_v32 = vmax.f32 %v819_v27, 0.0  ;;  %904 = vrot.lane.b32.xlu1 %v1900_v53, %s1560_s16 }
 0x2d8   : > { %v873_v15 = vmul.f32 %v871_v43, %v1644_v20  ;;  %v874_v47 = vmul.f32 %v872_v44, %v1648_v29 }
 0x2d9   : > { %v836_v35 = vpack.c.bf16 %v828_v32, %v828_v32 }
 0x2da   : > { %v875_v51 = vpack.c.bf16 %v873_v15, %v873_v15  ;;  %v876_v52 = vpack.c.bf16 %v874_v47, %v874_v47 }
 0x2db   : > { %v947_v39 = vunpack.c.l.b16 %v836_v35 }
 0x2dc   : > { %v973_v55 = vunpack.c.l.b16 %v875_v51  ;;  %v974_v56 = vunpack.c.l.b16 %v876_v52 }
 0x2dd   : > { %v948_v41 = vpack.c.b16 %v947_v39, %v946_v38 }
 0x2de   : > { %v975_v59 = vpack.c.b16 %v974_v56, %v973_v55 }
 0x2df   : > { %1013 = vrot.lane.b32.xlu1 %v879_v45, %s1560_s16  ;;  %960 = vrot.lane.b32.xlu0 %v948_v41, %s1561_s17 }
 0x2e0   : > { %949 = vrot.lane.b32.xlu2 %v948_v41, %s1559_s15  ;;  %1171 = vmatmul.bf16.vlgmr.msrb.gmra.mxu2 %v948_v41 }
 0x2e7   : > { %969 = vrot.lane.b32.xlu1 %v948_v41, %s1560_s16  ;;  %967 = vrot.lane.b32.xlu0 %v922_v50, %s1559_s15 }
 0x2e8   : > { %958 = vrot.lane.b32.xlu2 %v1900_v53, %s1561_s17 }
 0x2ef   : > { %1024 = vrot.lane.b32.xlu1 %v887_v62, %s1561_s17  ;;  %999 = vrot.lane.b32.xlu0 %v975_v59, %s1560_s16 }
 0x2f0   : > { %1016 = vrot.lane.b32.xlu2 %v887_v62, %s1559_s15 }
 0x2f7   : > { %1007 = vrot.lane.b32.xlu1 %v879_v45, %s1561_s17  ;;  %933 = vrot.lane.b32.xlu0 %v1911_v11, %s1561_s17 }
 0x2f8   : > { %976 = vrot.lane.b32.xlu2 %v975_v59, %s1559_s15 }
 0x2ff   : > { %988 = vrot.lane.b32.xlu1 %v1911_v11, %s1559_s15  ;;  %1037 = vrot.lane.b32.xlu0 %v1036_v5, %s1559_s15 }
 0x300   : > { %923 = vrot.lane.b32.xlu2 %v922_v50, %s1560_s16 }
 0x308   : > { %1030 = vrot.lane.b32.xlu2 %v887_v62, %s1560_s16 }
 0x310   : > { %931 = vrot.lane.b32.xlu2 %v1876_v34, %s1561_s17 }
 0x319   : > { %v917_v20 = vpop.permute.xlu2 %916 }
 0x31a   : > { %v952_v7 = vsel %vm390_vm6, %v941_v6, %v917_v20 }
 0x33a   : > { %v950_v29 = vpop.permute.xlu2 %949 }
 0x341   : > { %v943_v8 = vpop.permute.xlu1 %942 }
 0x342   : > { %v954_v10 = vsel %vm393_vm7, %v952_v7, %v943_v8  ;;  %v959_v16 = vpop.permute.xlu2 %958  ;;  %v1018_v23 = vsel %vm390_vm6, %v943_v8, %v950_v29 }
 0x343   : > { %v956_v12 = vsel %vm396_vm8, %v954_v10, %v950_v29 }
 0x344   : > { %1146 = vmatmul.bf16.vlgmr.msrb.gmra.mxu1 %v956_v12 }
 0x349   : > { %v905_v18 = vpop.permute.xlu1 %904 }
 0x34a   : > { %v908_v19 = vsel %vm390_vm6, %v903_v17, %v905_v18  ;;  %v1017_v22 = vpop.permute.xlu2 %1016 }
 0x34b   : > { %v909_v21 = vsel %vm393_vm7, %v908_v19, %v903_v17 }
 0x34c   : > { %v910_v34 = vsel %vm396_vm8, %v909_v21, %v905_v18 }
 0x34d   : > { %1126 = vmatmul.bf16.gmra.mxu0 %v910_v34 }
 0x351   : > { %v1014_v24 = vpop.permute.xlu1 %1013  ;;  %v961_v25 = vpop.permute.xlu0 %960 }
 0x352   : > { %v1020_v26 = vsel %vm393_vm7, %v1018_v23, %v1014_v24  ;;  %v964_v27 = vsel %vm393_vm7, %v959_v16, %v961_v25  ;;  %v977_v31 = vpop.permute.xlu2 %976 }
 0x353   : > { %v965_v28 = vsel %vm396_vm8, %v964_v27, %v961_v25  ;;  %v1022_v30 = vsel %vm396_vm8, %v1020_v26, %v1017_v22 }
 0x354   : > { %1151 = vmatmul.bf16.gmra.mxu1 %v965_v28  ;;  %1186 = vmatmul.bf16.vlgmr.msrb.gmra.mxu3 %v1022_v30 }
 0x359   : > { %v970_v32 = vpop.permute.xlu1 %969  ;;  %v968_v33 = vpop.permute.xlu0 %967 }
 0x35a   : > { %v979_v35 = vsel %vm390_vm6, %v905_v18, %v968_v33  ;;  %v924_v38 = vpop.permute.xlu2 %923  ;;  %v1039_v52 = vsel %vm390_vm6, %v970_v32, %v977_v31 }
 0x35b   : > { %v981_v36 = vsel %vm393_vm7, %v979_v35, %v970_v32  ;;  %v927_v46 = vsel %vm390_vm6, %v917_v20, %v924_v38 }
 0x35c   : > { %v983_v14 = vsel %vm396_vm8, %v981_v36, %v977_v31  ;;  %v928_v15 = vsel %vm393_vm7, %v927_v46, %v917_v20 }
 0x35d   : > { %1131 = vmatmul.bf16.gmra.mxu0 %v1900_v53  ;;  %v929_v50 = vsel %vm396_vm8, %v928_v15, %v924_v38 }
 0x361   : > { %v1025_v37 = vpop.permute.xlu1 %1024  ;;  %v1000_v9 = vpop.permute.xlu0 %999 }
 0x362   : > { %v1027_v39 = vsel %vm393_vm7, %v961_v25, %v1025_v37  ;;  %v1002_v40 = vsel %vm390_vm6, %v950_v29, %v1000_v9  ;;  %v1031_v48 = vpop.permute.xlu2 %1030 }
 0x363   : > { %v1172_v41 = vpop.f32.mrf.mxu2  ;;  %v1028_v43 = vsel %vm396_vm8, %v1027_v39, %v1025_v37  ;;  %v1003_v44 = vsel %vm393_vm7, %v1002_v40, %v950_v29  ;;  %v1041_v54 = vsel %vm393_vm7, %v1039_v52, %v1031_v48 }
 0x364   : > { %v1173_v53 = vadd.f32 %v1889_v42, %v1172_v41  ;;  %1156 = vmatmul.bf16.gmra.mxu1 %v983_v14  ;;  %1191 = vmatmul.bf16.gmra.mxu3 %v1028_v43  ;;  %v1004_v45 = vsel %vm396_vm8, %v1003_v44, %v1000_v9 }
 0x365   : > { %1176 = vmatmul.bf16.gmra.mxu2 %v1004_v45 }
 0x366   : > { %1223 = vst.msk [vmem:[%s1894_s20 + $0xa0] sm:$0xff] %vm1202_vm9, %v1173_v53 }
 0x369   : > { %v934_v3 = vpop.permute.xlu0 %933  ;;  %v1008_v51 = vpop.permute.xlu1 %1007 }
 0x36a   : > { %v1010_v56 = vsel %vm393_vm7, %v934_v3, %v1008_v51  ;;  %v932_v59 = vpop.permute.xlu2 %931 }
 0x36b   : > { %v1174_v47 = vpop.f32.mrf.mxu2  ;;  %v1011_v58 = vsel %vm396_vm8, %v1010_v56, %v1008_v51  ;;  %v937_v60 = vsel %vm393_vm7, %v932_v59, %v934_v3 }
 0x36c   : > { %v1175_v49 = vadd.f32 %v1889_v42, %v1174_v47  ;;  %v938_v62 = vsel %vm396_vm8, %v937_v60, %v934_v3 }
 0x36d   : > { %1136 = vmatmul.bf16.gmra.mxu0 %v929_v50 }
 0x36e   : > { %1224 = vst.msk [vmem:[%s1894_s20 + $0xa8] sm:$0xff] %vm1202_vm9, %v1175_v49 }
 0x371   : > { %v1038_v55 = vpop.permute.xlu0 %1037  ;;  %v989_v61 = vpop.permute.xlu1 %988 }
 0x372   : > { %v1043_v57 = vsel %vm396_vm8, %v1041_v54, %v1038_v55  ;;  %v991_v63 = vsel %vm390_vm6, %v989_v61, %v970_v32 }
 0x373   : > { %v992_v0 = vsel %vm393_vm7, %v991_v63, %v989_v61 }
 0x374   : > { %1161 = vmatmul.bf16.gmra.mxu1 %v1911_v11  ;;  %1196 = vmatmul.bf16.gmra.mxu3 %v1043_v57  ;;  %v993_v11 = vsel %vm396_vm8, %v992_v0, %v970_v32 }
 0x375   : > { %1181 = vmatmul.bf16.gmra.mxu2 %v1011_v58 }
 0x37d   : > { %1141 = vmatmul.bf16.gmra.mxu0 %v938_v62 }
 0x384   : > { %1166 = vmatmul.bf16.gmra.mxu1 %v993_v11 }
 0x3c1   : > { %v1147_v1 = vpop.f32.mrf.mxu1 }
 0x3c2   : > { %v1148_v2 = vadd.f32 %v1889_v42, %v1147_v1 }
 0x3c4   : > { %1213 = vst.msk [vmem:[%s1894_s20 + $0x50] sm:$0xff] %vm1202_vm9, %v1148_v2 }
 0x3c9   : > { %v1149_v13 = vpop.f32.mrf.mxu1 }
 0x3ca   : > { %v1150_v4 = vadd.f32 %v1889_v42, %v1149_v13  ;;  %v1127_v5 = vpop.f32.mrf.mxu0 }
 0x3cb   : > { %v1128_v20 = vadd.f32 %v1889_v42, %v1127_v5 }
 0x3cc   : > { %1214 = vst.msk [vmem:[%s1894_s20 + $0x58] sm:$0xff] %vm1202_vm9, %v1150_v4 }
 0x3cd   : > { %1205 = vst.msk [vmem:[%s1894_s20 + $0x10] sm:$0xff] %vm1202_vm9, %v1128_v20 }
 0x3d1   : > { %v1152_v29 = vpop.f32.mrf.mxu1 }
 0x3d2   : > { %v1153_v6 = vadd.f32 %v1889_v42, %v1152_v29  ;;  %v1129_v7 = vpop.f32.mrf.mxu0 }
 0x3d3   : > { %v1130_v8 = vadd.f32 %v1889_v42, %v1129_v7 }
 0x3d4   : > { %1215 = vst.msk [vmem:[%s1894_s20 + $0x60] sm:$0xff] %vm1202_vm9, %v1153_v6 }
 0x3d5   : > { %1206 = vst.msk [vmem:[%s1894_s20 + $0x18] sm:$0xff] %vm1202_vm9, %v1130_v8 }
 0x3d7   : > { %v1187_v10 = vpop.f32.mrf.mxu3 }
 0x3d8   : > { %v1188_v12 = vadd.f32 %v1889_v42, %v1187_v10 }
 0x3d9   : > { %v1154_v16 = vpop.f32.mrf.mxu1 }
 0x3da   : > { %1229 = vst.msk [vmem:[%s1894_s20 + $0xd0] sm:$0xff] %vm1202_vm9, %v1188_v12  ;;  %v1155_v17 = vadd.f32 %v1889_v42, %v1154_v16  ;;  %v1132_v18 = vpop.f32.mrf.mxu0 }
 0x3db   : > { %v1133_v19 = vadd.f32 %v1889_v42, %v1132_v18 }
 0x3dc   : > { %1216 = vst.msk [vmem:[%s1894_s20 + $0x68] sm:$0xff] %vm1202_vm9, %v1155_v17 }
 0x3dd   : > { %1207 = vst.msk [vmem:[%s1894_s20 + $0x20] sm:$0xff] %vm1202_vm9, %v1133_v19 }
 0x3df   : > { %v1189_v21 = vpop.f32.mrf.mxu3 }
 0x3e0   : > { %v1190_v34 = vadd.f32 %v1889_v42, %v1189_v21 }
 0x3e1   : > { %v1157_v22 = vpop.f32.mrf.mxu1 }
 0x3e2   : > { %1230 = vst.msk [vmem:[%s1894_s20 + $0xd8] sm:$0xff] %vm1202_vm9, %v1190_v34  ;;  %v1158_v23 = vadd.f32 %v1889_v42, %v1157_v22  ;;  %v1134_v24 = vpop.f32.mrf.mxu0 }
 0x3e3   : > { %v1135_v25 = vadd.f32 %v1889_v42, %v1134_v24 }
 0x3e4   : > { %1217 = vst.msk [vmem:[%s1894_s20 + $0x70] sm:$0xff] %vm1202_vm9, %v1158_v23 }
 0x3e5   : > { %1208 = vst.msk [vmem:[%s1894_s20 + $0x28] sm:$0xff] %vm1202_vm9, %v1135_v25 }
 0x3e7   : > { %v1192_v26 = vpop.f32.mrf.mxu3 }
 0x3e8   : > { %v1193_v27 = vadd.f32 %v1889_v42, %v1192_v26  ;;  %v1177_v28 = vpop.f32.mrf.mxu2 }
 0x3e9   : > { %v1178_v30 = vadd.f32 %v1889_v42, %v1177_v28  ;;  %v1159_v31 = vpop.f32.mrf.mxu1 }
 0x3ea   : > { %1231 = vst.msk [vmem:[%s1894_s20 + $0xe0] sm:$0xff] %vm1202_vm9, %v1193_v27  ;;  %v1160_v32 = vadd.f32 %v1889_v42, %v1159_v31  ;;  %v1137_v33 = vpop.f32.mrf.mxu0 }
 0x3eb   : > { %1225 = vst.msk [vmem:[%s1894_s20 + $0xb0] sm:$0xff] %vm1202_vm9, %v1178_v30  ;;  %v1138_v35 = vadd.f32 %v1889_v42, %v1137_v33 }
 0x3ec   : > { %1218 = vst.msk [vmem:[%s1894_s20 + $0x78] sm:$0xff] %vm1202_vm9, %v1160_v32 }
 0x3ed   : > { %1209 = vst.msk [vmem:[%s1894_s20 + $0x30] sm:$0xff] %vm1202_vm9, %v1138_v35 }
 0x3ef   : > { %v1194_v36 = vpop.f32.mrf.mxu3 }
 0x3f0   : > { %v1195_v37 = vadd.f32 %v1889_v42, %v1194_v36  ;;  %v1179_v9 = vpop.f32.mrf.mxu2 }
 0x3f1   : > { %v1180_v38 = vadd.f32 %v1889_v42, %v1179_v9  ;;  %v1162_v39 = vpop.f32.mrf.mxu1 }
 0x3f2   : > { %1232 = vst.msk [vmem:[%s1894_s20 + $0xe8] sm:$0xff] %vm1202_vm9, %v1195_v37  ;;  %v1163_v40 = vadd.f32 %v1889_v42, %v1162_v39  ;;  %v1139_v41 = vpop.f32.mrf.mxu0 }
 0x3f3   : > { %1226 = vst.msk [vmem:[%s1894_s20 + $0xb8] sm:$0xff] %vm1202_vm9, %v1180_v38  ;;  %v1140_v14 = vadd.f32 %v1889_v42, %v1139_v41 }
 0x3f4   : > { %1219 = vst.msk [vmem:[%s1894_s20 + $0x80] sm:$0xff] %vm1202_vm9, %v1163_v40 }
 0x3f5   : > { %1210 = vst.msk [vmem:[%s1894_s20 + $0x38] sm:$0xff] %vm1202_vm9, %v1140_v14 }
 0x3f7   : > { %v1197_v43 = vpop.f32.mrf.mxu3 }
 0x3f8   : > { %v1198_v44 = vadd.f32 %v1889_v42, %v1197_v43  ;;  %v1182_v53 = vpop.f32.mrf.mxu2 }
 0x3f9   : > { %v1183_v45 = vadd.f32 %v1889_v42, %v1182_v53  ;;  %v1164_v46 = vpop.f32.mrf.mxu1 }
 0x3fa   : > { %1233 = vst.msk [vmem:[%s1894_s20 + $0xf0] sm:$0xff] %vm1202_vm9, %v1198_v44  ;;  %v1165_v3 = vadd.f32 %v1889_v42, %v1164_v46  ;;  %v1142_v15 = vpop.f32.mrf.mxu0 }
 0x3fb   : > { %1227 = vst.msk [vmem:[%s1894_s20 + $0xc0] sm:$0xff] %vm1202_vm9, %v1183_v45  ;;  %v1143_v47 = vadd.f32 %v1889_v42, %v1142_v15 }
 0x3fc   : > { %1220 = vst.msk [vmem:[%s1894_s20 + $0x88] sm:$0xff] %vm1202_vm9, %v1165_v3 }
 0x3fd   : > { %1211 = vst.msk [vmem:[%s1894_s20 + $0x40] sm:$0xff] %vm1202_vm9, %v1143_v47 }
 0x3ff   : > { %v1199_v48 = vpop.f32.mrf.mxu3 }
 0x400   : > { %v1200_v49 = vadd.f32 %v1889_v42, %v1199_v48  ;;  %v1184_v50 = vpop.f32.mrf.mxu2 }
 0x401   : > { %v1185_v51 = vadd.f32 %v1889_v42, %v1184_v50  ;;  %v1167_v52 = vpop.f32.mrf.mxu1 }
 0x402   : > { %1234 = vst.msk [vmem:[%s1894_s20 + $0xf8] sm:$0xff] %vm1202_vm9, %v1200_v49  ;;  %v1168_v54 = vadd.f32 %v1889_v42, %v1167_v52  ;;  %v1144_v55 = vpop.f32.mrf.mxu0 }
 0x403   : > { %1228 = vst.msk [vmem:[%s1894_s20 + $0xc8] sm:$0xff] %vm1202_vm9, %v1185_v51  ;;  %v1145_v56 = vadd.f32 %v1889_v42, %v1144_v55 }
 0x404   : > { %1221 = vst.msk [vmem:[%s1894_s20 + $0x90] sm:$0xff] %vm1202_vm9, %v1168_v54 }
 0x405   : > { %1212 = vst.msk [vmem:[%s1894_s20 + $0x48] sm:$0xff] %vm1202_vm9, %v1145_v56 }
 0x409   : > { %v1169_v57 = vpop.f32.mrf.mxu1 }
 0x40a   : > { %v1170_v58 = vadd.f32 %v1889_v42, %v1169_v57 }
 0x40c   : > { %1222 = vst.msk [vmem:[%s1894_s20 + $0x98] sm:$0xff] %vm1202_vm9, %v1170_v58 }
 0x40d PF: > { %s18_s27 = sadd.s32 1, %s1555_s27  }
 0x40e   : > { %p15_p4 = scmp.ge.s32.totalorder %s18_s27, 4  }
 0x410   :  { %17 = sbr.rel (!%p15_p4) target bundleno = 1 (0x1), region = 82 }

</bundles_post_ra>
